<compile_context>
chip_gen: v7x
topology: tpu7x:2x2x1
jax: 0.10.0
libtpu: 0.0.40
codegen_flags: <defaults>
</compile_context>

<pallas_src>
import functools
import math

import jax
import jax.numpy as jnp
from jax.experimental import pallas as pl
from jax.experimental.pallas import tpu as pltpu

CP = 128          # conv channel padding (TPU lane width) -> lane-dense stores
OUT_LANES = 128   # packed head output slab width


# ------------------------------ geometry ------------------------------------

def _encoder_geometry(H, W, stride, num_layers):
    # TODO(synk): space-to-depth lowering of the stride-s first conv needs
    # H, W divisible by stride (true for SAC-AE's 84x84 / stride 2).
    assert H % stride == 0 and W % stride == 0
    Kp = -(-3 // stride)                      # ceil(3 / stride)
    H0, W0 = H // stride, W // stride         # post space-to-depth spatial dims
    Hn, Wn = H0 - (Kp - 1), W0 - (Kp - 1)     # == (H - 3) // stride + 1
    for _ in range(1, num_layers):
        Hn, Wn = Hn - 2, Wn - 2
    return H0, W0, Kp, Hn, Wn


# ----------------------------- Pallas kernels -------------------------------

def _conv_stack_kernel(*refs, shifts_per_layer, N0, W0, Hn, Wn, F):
    """Whole conv encoder for one sample (grid axis = batch).

    refs = (x, w_0..w_{L-1}, b_0..b_{L-1}, out, scratch0, scratch1)
      x       : (N0, C0)          flattened space-to-depth input (f32)
      w_l     : (T_l, Cin_l, CP)  per-tap weights (bf16, zero padded)
      b_l     : (1, CP)           bias (f32, zero padded)
      out     : (Hn, Wn, F)       valid output features (bf16)
      scratch : (N0, CP) f32      ping-pong activation buffers

    A 3x3 (stride-1) conv on the width-W0 flattened activation is the sum over
    taps of a row-shifted contiguous GEMM.  Rows past each layer's valid
    region hold garbage that provably never feeds a valid output position.
    """
    L = len(shifts_per_layer)
    x_ref = refs[0]
    w_refs = refs[1:1 + L]
    b_refs = refs[1 + L:1 + 2 * L]
    o_ref = refs[1 + 2 * L]
    scr = refs[2 + 2 * L:4 + 2 * L]

    src = x_ref
    for l, shifts in enumerate(shifts_per_layer):
        dst = scr[l % 2]
        w_l = w_refs[l]
        M = N0 - shifts[-1]                   # rows whose tap reads stay in-bounds
        for t, sh in enumerate(shifts):
            patch = src[sh:sh + M, :].astype(jnp.bfloat16)
            part = jnp.dot(patch, w_l[t], preferred_element_type=jnp.float32)
            if t == 0:
                dst[0:M, :] = part + b_refs[l][...]
            else:
                dst[0:M, :] = dst[0:M, :] + part
        dst[0:M, :] = jnp.maximum(dst[0:M, :], 0.0)       # fused ReLU
        src = dst

    last = scr[(L - 1) % 2]
    for oh in range(Hn):                                  # compact valid region
        o_ref[oh] = last[oh * W0:oh * W0 + Wn, 0:F].astype(o_ref.dtype)


def _mlp_head_kernel(h_ref, noise_ref, fcw_ref, fcb_ref, lng_ref, lnb_ref,
                     w1_ref, b1_ref, w2_ref, b2_ref, w3_ref, b3_ref, o_ref,
                     *, action_dim, log_std_min, log_std_max):
    """fc + LayerNorm + tanh + trunk MLP + SAC actor head, one batch block."""
    A = action_dim
    h = h_ref[...]                                        # (TB, D) bf16

    # encoder fc + LayerNorm(eps=1e-5, biased var) + tanh
    x = jnp.dot(h, fcw_ref[...], preferred_element_type=jnp.float32)
    x = x + fcb_ref[...]
    mean = jnp.mean(x, axis=-1, keepdims=True)
    var = jnp.mean(jnp.square(x - mean), axis=-1, keepdims=True)
    x = (x - mean) * jax.lax.rsqrt(var + 1e-5)
    x = jnp.tanh(x * lng_ref[...] + lnb_ref[...])

    # trunk MLP (Linear/ReLU/Linear/ReLU/Linear)
    t = jnp.dot(x.astype(jnp.bfloat16), w1_ref[...],
                preferred_element_type=jnp.float32) + b1_ref[...]
    t = jnp.maximum(t, 0.0)
    t = jnp.dot(t.astype(jnp.bfloat16), w2_ref[...],
                preferred_element_type=jnp.float32) + b2_ref[...]
    t = jnp.maximum(t, 0.0)
    y = jnp.dot(t.astype(jnp.bfloat16), w3_ref[...],
                preferred_element_type=jnp.float32) + b3_ref[...]

    mu = y[:, 0:A]
    log_std = jnp.tanh(y[:, A:2 * A])
    log_std = log_std_min + 0.5 * (log_std_max - log_std_min) * (log_std + 1.0)

    noise = noise_ref[...]
    pi = mu + noise * jnp.exp(log_std)                    # reparameterized sample

    # gaussian_logprob
    log_pi = jnp.sum(-0.5 * noise * noise - log_std, axis=-1, keepdims=True)
    log_pi = log_pi - 0.5 * math.log(2.0 * math.pi) * A

    # squash
    mu_t = jnp.tanh(mu)
    pi_t = jnp.tanh(pi)
    log_pi = log_pi - jnp.sum(
        jnp.log(jnp.maximum(1.0 - pi_t * pi_t, 0.0) + 1e-6),
        axis=-1, keepdims=True)

    # single lane-dense output slab: [mu | pi | log_std | log_pi | zero pad]
    tb = o_ref.shape[0]
    pad = o_ref.shape[1] - (3 * A + 1)
    pieces = [mu_t, pi_t, log_std, log_pi]
    if pad > 0:
        pieces.append(jnp.zeros((tb, pad), jnp.float32))
    o_ref[...] = jnp.concatenate(pieces, axis=-1)


# ------------------------------ pallas wrappers ------------------------------

def conv_stack(x, conv_w, conv_b, *, W0, Kp, Hn, Wn, num_layers, num_filters):
    """x: (B, H0*W0, s*s*C) f32. Returns (B, Hn, Wn, num_filters) bf16."""
    B, N0, C0 = x.shape
    shifts = [[dh * W0 + dw for dh in range(Kp) for dw in range(Kp)]]
    for _ in range(1, num_layers):
        shifts.append([kh * W0 + kw for kh in range(3) for kw in range(3)])

    kernel = functools.partial(
        _conv_stack_kernel, shifts_per_layer=shifts, N0=N0, W0=W0,
        Hn=Hn, Wn=Wn, F=num_filters)

    in_specs = [pl.BlockSpec((None, N0, C0), lambda b: (b, 0, 0))]
    in_specs += [pl.BlockSpec(w.shape, lambda b: (0, 0, 0)) for w in conv_w]
    in_specs += [pl.BlockSpec(bb.shape, lambda b: (0, 0)) for bb in conv_b]

    return pl.pallas_call(
        kernel,
        out_shape=jax.ShapeDtypeStruct((B, Hn, Wn, num_filters), jnp.bfloat16),
        grid=(B,),
        in_specs=in_specs,
        out_specs=pl.BlockSpec((None, Hn, Wn, num_filters),
                               lambda b: (b, 0, 0, 0)),
        scratch_shapes=[pltpu.VMEM((N0, CP), jnp.float32),
                        pltpu.VMEM((N0, CP), jnp.float32)],
        compiler_params=pltpu.CompilerParams(
            dimension_semantics=("parallel",),
            vmem_limit_bytes=48 * 1024 * 1024),
    )(x, *conv_w, *conv_b)


def mlp_head(h, noise, p, *, action_dim, log_std_min, log_std_max):
    """h: (B, flat_dim) bf16.  Returns packed (B, 128) f32 slab."""
    B, D = h.shape
    A = action_dim
    assert 3 * A + 1 <= OUT_LANES  # TODO(synk): widen packed slab for A > 42
    TB = B if B <= 128 else 128
    grid = (pl.cdiv(B, TB),)

    batch_map = lambda i: (i, 0)
    const_map = lambda i: (0, 0)

    weight_names = ["fc_w", "fc_b", "ln_g", "ln_b",
                    "t1_w", "t1_b", "t2_w", "t2_b", "t3_w", "t3_b"]
    weights = [p[n] for n in weight_names]

    in_specs = [pl.BlockSpec((TB, D), batch_map),
                pl.BlockSpec((TB, A), batch_map)]
    in_specs += [pl.BlockSpec(w.shape, const_map) for w in weights]

    kernel = functools.partial(_mlp_head_kernel, action_dim=A,
                               log_std_min=log_std_min,
                               log_std_max=log_std_max)
    return pl.pallas_call(
        kernel,
        out_shape=jax.ShapeDtypeStruct((B, OUT_LANES), jnp.float32),
        grid=grid,
        in_specs=in_specs,
        out_specs=pl.BlockSpec((TB, OUT_LANES), batch_map),
        compiler_params=pltpu.CompilerParams(
            dimension_semantics=("parallel",),
            vmem_limit_bytes=48 * 1024 * 1024),
    )(h, noise, *weights)


# ------------------------------ init / packing -------------------------------

def orthogonal(key, shape, gain=1.0):
    """Mimics torch.nn.init.orthogonal_ for a 2-D (rows, cols) tensor."""
    rows, cols = shape
    n, m = (rows, cols) if rows >= cols else (cols, rows)
    a = jax.random.normal(key, (n, m), dtype=jnp.float32)
    q, r = jnp.linalg.qr(a)
    q = q * jnp.sign(jnp.diagonal(r))[None, :]
    if rows < cols:
        q = q.T
    return gain * q


def pack_first_conv_weight(w, stride):
    """Torch-layout (F, Cin, 3, 3) stride-s conv -> space-to-depth tap layout
    (Kp*Kp, stride*stride*Cin, CP), zero padded to CP output lanes."""
    F, Cin, _, _ = w.shape
    s = stride
    Kp = -(-3 // s)
    wt = jnp.zeros((Kp * Kp, s * s * Cin, CP), jnp.float32)
    for dh in range(Kp):
        for dw in range(Kp):
            for ph in range(s):
                for pw in range(s):
                    kh, kw = s * dh + ph, s * dw + pw
                    if kh < 3 and kw < 3:
                        wt = wt.at[dh * Kp + dw,
                                   (ph * s + pw) * Cin:(ph * s + pw + 1) * Cin,
                                   :F].set(w[:, :, kh, kw].T)
    return wt


def pack_conv_weight(w):
    """Torch-layout (F, Cin, 3, 3) stride-1 conv -> (9, CP, CP) tap layout."""
    F, Cin, _, _ = w.shape
    wt = jnp.zeros((9, CP, CP), jnp.float32)
    for kh in range(3):
        for kw in range(3):
            wt = wt.at[kh * 3 + kw, :Cin, :F].set(w[:, :, kh, kw].T)
    return wt


def init_actor_params(key, obs_shape, action_dim, hidden_dim,
                      encoder_feature_dim, num_layers, num_filters, stride):
    C, H, W = obs_shape
    H0, W0, Kp, Hn, Wn = _encoder_geometry(H, W, stride, num_layers)
    keys = jax.random.split(key, num_layers + 4)
    gain_relu = math.sqrt(2.0)                # nn.init.calculate_gain('relu')

    conv_w, conv_b = [], []
    in_ch = C
    for i in range(num_layers):
        # torch weight_init: zero everything, centre tap = orthogonal * gain
        w = jnp.zeros((num_filters, in_ch, 3, 3), jnp.float32)
        w = w.at[:, :, 1, 1].set(
            orthogonal(keys[i], (num_filters, in_ch), gain=gain_relu))
        wt = pack_first_conv_weight(w, stride) if i == 0 else pack_conv_weight(w)
        conv_w.append(wt.astype(jnp.bfloat16))
        conv_b.append(jnp.zeros((1, CP), jnp.float32))
        in_ch = num_filters

    flat_dim = Hn * Wn * num_filters

    # NOTE: flatten order is NHWC; for freshly drawn orthogonal weights this
    # is equivalent to torch's NCHW flatten up to a column permutation of the
    # random matrix (loading pretrained weights would need a row permutation).
    params = {
        "conv_w": conv_w,
        "conv_b": conv_b,
        "fc_w": orthogonal(keys[num_layers],
                           (encoder_feature_dim, flat_dim)).T.astype(jnp.bfloat16),
        "fc_b": jnp.zeros((1, encoder_feature_dim), jnp.float32),
        "ln_g": jnp.ones((1, encoder_feature_dim), jnp.float32),
        "ln_b": jnp.zeros((1, encoder_feature_dim), jnp.float32),
        "t1_w": orthogonal(keys[num_layers + 1],
                           (hidden_dim, encoder_feature_dim)).T.astype(jnp.bfloat16),
        "t1_b": jnp.zeros((1, hidden_dim), jnp.float32),
        "t2_w": orthogonal(keys[num_layers + 2],
                           (hidden_dim, hidden_dim)).T.astype(jnp.bfloat16),
        "t2_b": jnp.zeros((1, hidden_dim), jnp.float32),
        "t3_w": orthogonal(keys[num_layers + 3],
                           (2 * action_dim, hidden_dim)).T.astype(jnp.bfloat16),
        "t3_b": jnp.zeros((1, 2 * action_dim), jnp.float32),
    }
    return params


# ------------------------------ forward --------------------------------------

@functools.partial(jax.jit, static_argnames=(
    "num_layers", "num_filters", "stride", "action_dim",
    "log_std_min", "log_std_max"))
def actor_forward(params, obs, noise, *, num_layers, num_filters, stride,
                  action_dim, log_std_min, log_std_max):
    B, C, H, W = obs.shape
    H0, W0, Kp, Hn, Wn = _encoder_geometry(H, W, stride, num_layers)
    s = stride

    # obs/255 + NCHW -> NHWC space-to-depth, spatially flattened: one XLA pass
    # over the raw obs; everything downstream is NHWC with no transposes.
    x = obs.astype(jnp.float32) / 255.0
    x = x.reshape(B, C, H0, s, W0, s)
    x = x.transpose(0, 2, 4, 3, 5, 1)             # (B, i, j, ph, pw, c)
    x = x.reshape(B, H0 * W0, s * s * C)

    feats = conv_stack(x, params["conv_w"], params["conv_b"],
                       W0=W0, Kp=Kp, Hn=Hn, Wn=Wn,
                       num_layers=num_layers, num_filters=num_filters)
    h = feats.reshape(B, Hn * Wn * num_filters)   # contiguous -> free reshape

    packed = mlp_head(h, noise, params, action_dim=action_dim,
                      log_std_min=log_std_min, log_std_max=log_std_max)

    A = action_dim
    mu = packed[:, 0:A]
    pi = packed[:, A:2 * A]
    log_std = packed[:, 2 * A:3 * A]
    log_pi = packed[:, 3 * A:3 * A + 1]
    return mu, pi, log_pi, log_std


# ------------------------------- main ----------------------------------------

if __name__ == "__main__":
    B, C, H, W = 2, 4, 16, 16
    action_dim = 4
    hidden_dim = 32
    encoder_feature_dim = 32      # == encoder_output_dim
    num_layers = 2
    num_filters = 8
    stride = 2
    log_std_min, log_std_max = -10.0, 2.0

    key = jax.random.PRNGKey(0)
    kp, ko, kn = jax.random.split(key, 3)

    params = init_actor_params(kp, (C, H, W), action_dim, hidden_dim,
                               encoder_feature_dim, num_layers, num_filters,
                               stride)
    obs = jax.random.uniform(ko, (B, C, H, W), minval=0.0, maxval=255.0,
                             dtype=jnp.float32)
    # TODO(synk): torch.randn_like RNG stream cannot be reproduced; Gaussian
    # noise is generated here with jax.random and passed into the kernel.
    noise = jax.random.normal(kn, (B, action_dim), dtype=jnp.float32)

    mu, pi, log_pi, log_std = actor_forward(
        params, obs, noise, num_layers=num_layers, num_filters=num_filters,
        stride=stride, action_dim=action_dim,
        log_std_min=log_std_min, log_std_max=log_std_max)

    jax.block_until_ready((mu, pi, log_pi, log_std))
    assert mu.shape == (B, action_dim) and pi.shape == (B, action_dim)
    assert log_pi.shape == (B, 1) and log_std.shape == (B, action_dim)
    for t in (mu, pi, log_pi, log_std):
        assert bool(jnp.all(jnp.isfinite(t)))
    print("KERNEL_OK")
</pallas_src>

<mosaic_0001>
module attributes {stable_mosaic.version = 11 : i64} {
  func.func @_conv_stack_kernel(%arg0: i32, %arg1: memref<1x64x16xf32, #tpu.memory_space<vmem>>, %arg2: memref<4x16x128xbf16, #tpu.memory_space<vmem>>, %arg3: memref<9x128x128xbf16, #tpu.memory_space<vmem>>, %arg4: memref<1x128xf32, #tpu.memory_space<vmem>>, %arg5: memref<1x128xf32, #tpu.memory_space<vmem>>, %arg6: memref<1x5x5x8xbf16, #tpu.memory_space<vmem>>, %arg7: memref<64x128xf32, #tpu.memory_space<vmem>>, %arg8: memref<64x128xf32, #tpu.memory_space<vmem>>) attributes {dimension_semantics = [#tpu.dimension_semantics<parallel>], iteration_bounds = array<i64: 2>, scalar_prefetch = 0 : i64, scratch_operands = 2 : i64, tpu.core_type = #tpu.core_type<tc>, window_params = [{transform_indices = @transform_0, window_bounds = array<i64: 1, 64, 16>}, {pipeline_mode = #tpu.pipeline_mode<synchronous>, transform_indices = @transform_1, window_bounds = array<i64: 4, 16, 128>}, {pipeline_mode = #tpu.pipeline_mode<synchronous>, transform_indices = @transform_2, window_bounds = array<i64: 9, 128, 128>}, {pipeline_mode = #tpu.pipeline_mode<synchronous>, transform_indices = @transform_3, window_bounds = array<i64: 1, 128>}, {pipeline_mode = #tpu.pipeline_mode<synchronous>, transform_indices = @transform_4, window_bounds = array<i64: 1, 128>}, {transform_indices = @transform_5, window_bounds = array<i64: 1, 5, 5, 8>}]} {
    %c0 = arith.constant 0 : index
    %c0_0 = arith.constant 0 : index
    %c0_1 = arith.constant 0 : index
    %0 = vector.load %arg1[%c0, %c0_0, %c0_1] : memref<1x64x16xf32, #tpu.memory_space<vmem>>, vector<1x55x16xf32>
    %1 = vector.shape_cast %0 : vector<1x55x16xf32> to vector<55x16xf32>
    %2 = arith.truncf %1 : vector<55x16xf32> to vector<55x16xbf16>
    %c0_2 = arith.constant 0 : index
    %c0_3 = arith.constant 0 : index
    %c0_4 = arith.constant 0 : index
    %3 = vector.load %arg2[%c0_2, %c0_3, %c0_4] : memref<4x16x128xbf16, #tpu.memory_space<vmem>>, vector<1x16x128xbf16>
    %4 = vector.shape_cast %3 : vector<1x16x128xbf16> to vector<16x128xbf16>
    %cst = arith.constant dense<0.000000e+00> : vector<55x128xf32>
    %5 = tpu.matmul %2, %4, %cst {dimension_numbers = #tpu.dot_dimension_numbers<[1], [0], [0], [1], [0, 0, 1, 1], [], []>} : vector<55x16xbf16>, vector<16x128xbf16>, vector<55x128xf32> -> vector<55x128xf32>
    %c0_5 = arith.constant 0 : index
    %c0_6 = arith.constant 0 : index
    %6 = vector.load %arg4[%c0_5, %c0_6] : memref<1x128xf32, #tpu.memory_space<vmem>>, vector<1x128xf32>
    %7 = vector.broadcast %6 : vector<1x128xf32> to vector<55x128xf32>
    %8 = arith.addf %5, %7 : vector<55x128xf32>
    %c0_7 = arith.constant 0 : index
    %c0_8 = arith.constant 0 : index
    %9 = vector.load %arg7[%c0_7, %c0_8] : memref<64x128xf32, #tpu.memory_space<vmem>>, vector<55x128xf32>
    tpu.vector_store %arg7[%c0_7, %c0_8], %8 {strides = array<i32>} : memref<64x128xf32, #tpu.memory_space<vmem>>, vector<55x128xf32>,
    %c0_9 = arith.constant 0 : index
    %c1 = arith.constant 1 : index
    %c0_10 = arith.constant 0 : index
    %10 = vector.load %arg1[%c0_9, %c1, %c0_10] : memref<1x64x16xf32, #tpu.memory_space<vmem>>, vector<1x55x16xf32>
    %11 = vector.shape_cast %10 : vector<1x55x16xf32> to vector<55x16xf32>
    %12 = arith.truncf %11 : vector<55x16xf32> to vector<55x16xbf16>
    %c1_11 = arith.constant 1 : index
    %c0_12 = arith.constant 0 : index
    %c0_13 = arith.constant 0 : index
    %13 = vector.load %arg2[%c1_11, %c0_12, %c0_13] : memref<4x16x128xbf16, #tpu.memory_space<vmem>>, vector<1x16x128xbf16>
    %14 = vector.shape_cast %13 : vector<1x16x128xbf16> to vector<16x128xbf16>
    %cst_14 = arith.constant dense<0.000000e+00> : vector<55x128xf32>
    %15 = tpu.matmul %12, %14, %cst_14 {dimension_numbers = #tpu.dot_dimension_numbers<[1], [0], [0], [1], [0, 0, 1, 1], [], []>} : vector<55x16xbf16>, vector<16x128xbf16>, vector<55x128xf32> -> vector<55x128xf32>
    %c0_15 = arith.constant 0 : index
    %c0_16 = arith.constant 0 : index
    %16 = vector.load %arg7[%c0_15, %c0_16] : memref<64x128xf32, #tpu.memory_space<vmem>>, vector<55x128xf32>
    %17 = arith.addf %16, %15 : vector<55x128xf32>
    %c0_17 = arith.constant 0 : index
    %c0_18 = arith.constant 0 : index
    %18 = vector.load %arg7[%c0_17, %c0_18] : memref<64x128xf32, #tpu.memory_space<vmem>>, vector<55x128xf32>
    tpu.vector_store %arg7[%c0_17, %c0_18], %17 {strides = array<i32>} : memref<64x128xf32, #tpu.memory_space<vmem>>, vector<55x128xf32>,
    %c0_19 = arith.constant 0 : index
    %c8 = arith.constant 8 : index
    %c0_20 = arith.constant 0 : index
    %19 = vector.load %arg1[%c0_19, %c8, %c0_20] : memref<1x64x16xf32, #tpu.memory_space<vmem>>, vector<1x55x16xf32>
    %20 = vector.shape_cast %19 : vector<1x55x16xf32> to vector<55x16xf32>
    %21 = arith.truncf %20 : vector<55x16xf32> to vector<55x16xbf16>
    %c2 = arith.constant 2 : index
    %c0_21 = arith.constant 0 : index
    %c0_22 = arith.constant 0 : index
    %22 = vector.load %arg2[%c2, %c0_21, %c0_22] : memref<4x16x128xbf16, #tpu.memory_space<vmem>>, vector<1x16x128xbf16>
    %23 = vector.shape_cast %22 : vector<1x16x128xbf16> to vector<16x128xbf16>
    %cst_23 = arith.constant dense<0.000000e+00> : vector<55x128xf32>
    %24 = tpu.matmul %21, %23, %cst_23 {dimension_numbers = #tpu.dot_dimension_numbers<[1], [0], [0], [1], [0, 0, 1, 1], [], []>} : vector<55x16xbf16>, vector<16x128xbf16>, vector<55x128xf32> -> vector<55x128xf32>
    %c0_24 = arith.constant 0 : index
    %c0_25 = arith.constant 0 : index
    %25 = vector.load %arg7[%c0_24, %c0_25] : memref<64x128xf32, #tpu.memory_space<vmem>>, vector<55x128xf32>
    %26 = arith.addf %25, %24 : vector<55x128xf32>
    %c0_26 = arith.constant 0 : index
    %c0_27 = arith.constant 0 : index
    %27 = vector.load %arg7[%c0_26, %c0_27] : memref<64x128xf32, #tpu.memory_space<vmem>>, vector<55x128xf32>
    tpu.vector_store %arg7[%c0_26, %c0_27], %26 {strides = array<i32>} : memref<64x128xf32, #tpu.memory_space<vmem>>, vector<55x128xf32>,
    %c0_28 = arith.constant 0 : index
    %c9 = arith.constant 9 : index
    %c0_29 = arith.constant 0 : index
    %28 = vector.load %arg1[%c0_28, %c9, %c0_29] : memref<1x64x16xf32, #tpu.memory_space<vmem>>, vector<1x55x16xf32>
    %29 = vector.shape_cast %28 : vector<1x55x16xf32> to vector<55x16xf32>
    %30 = arith.truncf %29 : vector<55x16xf32> to vector<55x16xbf16>
    %c3 = arith.constant 3 : index
    %c0_30 = arith.constant 0 : index
    %c0_31 = arith.constant 0 : index
    %31 = vector.load %arg2[%c3, %c0_30, %c0_31] : memref<4x16x128xbf16, #tpu.memory_space<vmem>>, vector<1x16x128xbf16>
    %32 = vector.shape_cast %31 : vector<1x16x128xbf16> to vector<16x128xbf16>
    %cst_32 = arith.constant dense<0.000000e+00> : vector<55x128xf32>
    %33 = tpu.matmul %30, %32, %cst_32 {dimension_numbers = #tpu.dot_dimension_numbers<[1], [0], [0], [1], [0, 0, 1, 1], [], []>} : vector<55x16xbf16>, vector<16x128xbf16>, vector<55x128xf32> -> vector<55x128xf32>
    %c0_33 = arith.constant 0 : index
    %c0_34 = arith.constant 0 : index
    %34 = vector.load %arg7[%c0_33, %c0_34] : memref<64x128xf32, #tpu.memory_space<vmem>>, vector<55x128xf32>
    %35 = arith.addf %34, %33 : vector<55x128xf32>
    %c0_35 = arith.constant 0 : index
    %c0_36 = arith.constant 0 : index
    %36 = vector.load %arg7[%c0_35, %c0_36] : memref<64x128xf32, #tpu.memory_space<vmem>>, vector<55x128xf32>
    tpu.vector_store %arg7[%c0_35, %c0_36], %35 {strides = array<i32>} : memref<64x128xf32, #tpu.memory_space<vmem>>, vector<55x128xf32>,
    %c0_37 = arith.constant 0 : index
    %c0_38 = arith.constant 0 : index
    %37 = vector.load %arg7[%c0_37, %c0_38] : memref<64x128xf32, #tpu.memory_space<vmem>>, vector<55x128xf32>
    %cst_39 = arith.constant 0.000000e+00 : f32
    %38 = vector.broadcast %cst_39 : f32 to vector<55x128xf32>
    %39 = arith.maximumf %37, %38 : vector<55x128xf32>
    %c0_40 = arith.constant 0 : index
    %c0_41 = arith.constant 0 : index
    %40 = vector.load %arg7[%c0_40, %c0_41] : memref<64x128xf32, #tpu.memory_space<vmem>>, vector<55x128xf32>
    tpu.vector_store %arg7[%c0_40, %c0_41], %39 {strides = array<i32>} : memref<64x128xf32, #tpu.memory_space<vmem>>, vector<55x128xf32>,
    %c0_42 = arith.constant 0 : index
    %c0_43 = arith.constant 0 : index
    %41 = vector.load %arg7[%c0_42, %c0_43] : memref<64x128xf32, #tpu.memory_space<vmem>>, vector<46x128xf32>
    %42 = arith.truncf %41 : vector<46x128xf32> to vector<46x128xbf16>
    %c0_44 = arith.constant 0 : index
    %c0_45 = arith.constant 0 : index
    %c0_46 = arith.constant 0 : index
    %43 = vector.load %arg3[%c0_44, %c0_45, %c0_46] : memref<9x128x128xbf16, #tpu.memory_space<vmem>>, vector<1x128x128xbf16>
    %44 = vector.shape_cast %43 : vector<1x128x128xbf16> to vector<128x128xbf16>
    %cst_47 = arith.constant dense<0.000000e+00> : vector<46x128xf32>
    %45 = tpu.matmul %42, %44, %cst_47 {dimension_numbers = #tpu.dot_dimension_numbers<[1], [0], [0], [1], [0, 0, 1, 1], [], []>} : vector<46x128xbf16>, vector<128x128xbf16>, vector<46x128xf32> -> vector<46x128xf32>
    %c0_48 = arith.constant 0 : index
    %c0_49 = arith.constant 0 : index
    %46 = vector.load %arg5[%c0_48, %c0_49] : memref<1x128xf32, #tpu.memory_space<vmem>>, vector<1x128xf32>
    %47 = vector.broadcast %46 : vector<1x128xf32> to vector<46x128xf32>
    %48 = arith.addf %45, %47 : vector<46x128xf32>
    %c0_50 = arith.constant 0 : index
    %c0_51 = arith.constant 0 : index
    %49 = vector.load %arg8[%c0_50, %c0_51] : memref<64x128xf32, #tpu.memory_space<vmem>>, vector<46x128xf32>
    tpu.vector_store %arg8[%c0_50, %c0_51], %48 {strides = array<i32>} : memref<64x128xf32, #tpu.memory_space<vmem>>, vector<46x128xf32>,
    %c1_52 = arith.constant 1 : index
    %c0_53 = arith.constant 0 : index
    %50 = vector.load %arg7[%c1_52, %c0_53] : memref<64x128xf32, #tpu.memory_space<vmem>>, vector<46x128xf32>
    %51 = arith.truncf %50 : vector<46x128xf32> to vector<46x128xbf16>
    %c1_54 = arith.constant 1 : index
    %c0_55 = arith.constant 0 : index
    %c0_56 = arith.constant 0 : index
    %52 = vector.load %arg3[%c1_54, %c0_55, %c0_56] : memref<9x128x128xbf16, #tpu.memory_space<vmem>>, vector<1x128x128xbf16>
    %53 = vector.shape_cast %52 : vector<1x128x128xbf16> to vector<128x128xbf16>
    %cst_57 = arith.constant dense<0.000000e+00> : vector<46x128xf32>
    %54 = tpu.matmul %51, %53, %cst_57 {dimension_numbers = #tpu.dot_dimension_numbers<[1], [0], [0], [1], [0, 0, 1, 1], [], []>} : vector<46x128xbf16>, vector<128x128xbf16>, vector<46x128xf32> -> vector<46x128xf32>
    %c0_58 = arith.constant 0 : index
    %c0_59 = arith.constant 0 : index
    %55 = vector.load %arg8[%c0_58, %c0_59] : memref<64x128xf32, #tpu.memory_space<vmem>>, vector<46x128xf32>
    %56 = arith.addf %55, %54 : vector<46x128xf32>
    %c0_60 = arith.constant 0 : index
    %c0_61 = arith.constant 0 : index
    %57 = vector.load %arg8[%c0_60, %c0_61] : memref<64x128xf32, #tpu.memory_space<vmem>>, vector<46x128xf32>
    tpu.vector_store %arg8[%c0_60, %c0_61], %56 {strides = array<i32>} : memref<64x128xf32, #tpu.memory_space<vmem>>, vector<46x128xf32>,
    %c2_62 = arith.constant 2 : index
    %c0_63 = arith.constant 0 : index
    %58 = vector.load %arg7[%c2_62, %c0_63] : memref<64x128xf32, #tpu.memory_space<vmem>>, vector<46x128xf32>
    %59 = arith.truncf %58 : vector<46x128xf32> to vector<46x128xbf16>
    %c2_64 = arith.constant 2 : index
    %c0_65 = arith.constant 0 : index
    %c0_66 = arith.constant 0 : index
    %60 = vector.load %arg3[%c2_64, %c0_65, %c0_66] : memref<9x128x128xbf16, #tpu.memory_space<vmem>>, vector<1x128x128xbf16>
    %61 = vector.shape_cast %60 : vector<1x128x128xbf16> to vector<128x128xbf16>
    %cst_67 = arith.constant dense<0.000000e+00> : vector<46x128xf32>
    %62 = tpu.matmul %59, %61, %cst_67 {dimension_numbers = #tpu.dot_dimension_numbers<[1], [0], [0], [1], [0, 0, 1, 1], [], []>} : vector<46x128xbf16>, vector<128x128xbf16>, vector<46x128xf32> -> vector<46x128xf32>
    %c0_68 = arith.constant 0 : index
    %c0_69 = arith.constant 0 : index
    %63 = vector.load %arg8[%c0_68, %c0_69] : memref<64x128xf32, #tpu.memory_space<vmem>>, vector<46x128xf32>
    %64 = arith.addf %63, %62 : vector<46x128xf32>
    %c0_70 = arith.constant 0 : index
    %c0_71 = arith.constant 0 : index
    %65 = vector.load %arg8[%c0_70, %c0_71] : memref<64x128xf32, #tpu.memory_space<vmem>>, vector<46x128xf32>
    tpu.vector_store %arg8[%c0_70, %c0_71], %64 {strides = array<i32>} : memref<64x128xf32, #tpu.memory_space<vmem>>, vector<46x128xf32>,
    %c8_72 = arith.constant 8 : index
    %c0_73 = arith.constant 0 : index
    %66 = vector.load %arg7[%c8_72, %c0_73] : memref<64x128xf32, #tpu.memory_space<vmem>>, vector<46x128xf32>
    %67 = arith.truncf %66 : vector<46x128xf32> to vector<46x128xbf16>
    %c3_74 = arith.constant 3 : index
    %c0_75 = arith.constant 0 : index
    %c0_76 = arith.constant 0 : index
    %68 = vector.load %arg3[%c3_74, %c0_75, %c0_76] : memref<9x128x128xbf16, #tpu.memory_space<vmem>>, vector<1x128x128xbf16>
    %69 = vector.shape_cast %68 : vector<1x128x128xbf16> to vector<128x128xbf16>
    %cst_77 = arith.constant dense<0.000000e+00> : vector<46x128xf32>
    %70 = tpu.matmul %67, %69, %cst_77 {dimension_numbers = #tpu.dot_dimension_numbers<[1], [0], [0], [1], [0, 0, 1, 1], [], []>} : vector<46x128xbf16>, vector<128x128xbf16>, vector<46x128xf32> -> vector<46x128xf32>
    %c0_78 = arith.constant 0 : index
    %c0_79 = arith.constant 0 : index
    %71 = vector.load %arg8[%c0_78, %c0_79] : memref<64x128xf32, #tpu.memory_space<vmem>>, vector<46x128xf32>
    %72 = arith.addf %71, %70 : vector<46x128xf32>
    %c0_80 = arith.constant 0 : index
    %c0_81 = arith.constant 0 : index
    %73 = vector.load %arg8[%c0_80, %c0_81] : memref<64x128xf32, #tpu.memory_space<vmem>>, vector<46x128xf32>
    tpu.vector_store %arg8[%c0_80, %c0_81], %72 {strides = array<i32>} : memref<64x128xf32, #tpu.memory_space<vmem>>, vector<46x128xf32>,
    %c9_82 = arith.constant 9 : index
    %c0_83 = arith.constant 0 : index
    %74 = vector.load %arg7[%c9_82, %c0_83] : memref<64x128xf32, #tpu.memory_space<vmem>>, vector<46x128xf32>
    %75 = arith.truncf %74 : vector<46x128xf32> to vector<46x128xbf16>
    %c4 = arith.constant 4 : index
    %c0_84 = arith.constant 0 : index
    %c0_85 = arith.constant 0 : index
    %76 = vector.load %arg3[%c4, %c0_84, %c0_85] : memref<9x128x128xbf16, #tpu.memory_space<vmem>>, vector<1x128x128xbf16>
    %77 = vector.shape_cast %76 : vector<1x128x128xbf16> to vector<128x128xbf16>
    %cst_86 = arith.constant dense<0.000000e+00> : vector<46x128xf32>
    %78 = tpu.matmul %75, %77, %cst_86 {dimension_numbers = #tpu.dot_dimension_numbers<[1], [0], [0], [1], [0, 0, 1, 1], [], []>} : vector<46x128xbf16>, vector<128x128xbf16>, vector<46x128xf32> -> vector<46x128xf32>
    %c0_87 = arith.constant 0 : index
    %c0_88 = arith.constant 0 : index
    %79 = vector.load %arg8[%c0_87, %c0_88] : memref<64x128xf32, #tpu.memory_space<vmem>>, vector<46x128xf32>
    %80 = arith.addf %79, %78 : vector<46x128xf32>
    %c0_89 = arith.constant 0 : index
    %c0_90 = arith.constant 0 : index
    %81 = vector.load %arg8[%c0_89, %c0_90] : memref<64x128xf32, #tpu.memory_space<vmem>>, vector<46x128xf32>
    tpu.vector_store %arg8[%c0_89, %c0_90], %80 {strides = array<i32>} : memref<64x128xf32, #tpu.memory_space<vmem>>, vector<46x128xf32>,
    %c10 = arith.constant 10 : index
    %c0_91 = arith.constant 0 : index
    %82 = vector.load %arg7[%c10, %c0_91] : memref<64x128xf32, #tpu.memory_space<vmem>>, vector<46x128xf32>
    %83 = arith.truncf %82 : vector<46x128xf32> to vector<46x128xbf16>
    %c5 = arith.constant 5 : index
    %c0_92 = arith.constant 0 : index
    %c0_93 = arith.constant 0 : index
    %84 = vector.load %arg3[%c5, %c0_92, %c0_93] : memref<9x128x128xbf16, #tpu.memory_space<vmem>>, vector<1x128x128xbf16>
    %85 = vector.shape_cast %84 : vector<1x128x128xbf16> to vector<128x128xbf16>
    %cst_94 = arith.constant dense<0.000000e+00> : vector<46x128xf32>
    %86 = tpu.matmul %83, %85, %cst_94 {dimension_numbers = #tpu.dot_dimension_numbers<[1], [0], [0], [1], [0, 0, 1, 1], [], []>} : vector<46x128xbf16>, vector<128x128xbf16>, vector<46x128xf32> -> vector<46x128xf32>
    %c0_95 = arith.constant 0 : index
    %c0_96 = arith.constant 0 : index
    %87 = vector.load %arg8[%c0_95, %c0_96] : memref<64x128xf32, #tpu.memory_space<vmem>>, vector<46x128xf32>
    %88 = arith.addf %87, %86 : vector<46x128xf32>
    %c0_97 = arith.constant 0 : index
    %c0_98 = arith.constant 0 : index
    %89 = vector.load %arg8[%c0_97, %c0_98] : memref<64x128xf32, #tpu.memory_space<vmem>>, vector<46x128xf32>
    tpu.vector_store %arg8[%c0_97, %c0_98], %88 {strides = array<i32>} : memref<64x128xf32, #tpu.memory_space<vmem>>, vector<46x128xf32>,
    %c16 = arith.constant 16 : index
    %c0_99 = arith.constant 0 : index
    %90 = vector.load %arg7[%c16, %c0_99] : memref<64x128xf32, #tpu.memory_space<vmem>>, vector<46x128xf32>
    %91 = arith.truncf %90 : vector<46x128xf32> to vector<46x128xbf16>
    %c6 = arith.constant 6 : index
    %c0_100 = arith.constant 0 : index
    %c0_101 = arith.constant 0 : index
    %92 = vector.load %arg3[%c6, %c0_100, %c0_101] : memref<9x128x128xbf16, #tpu.memory_space<vmem>>, vector<1x128x128xbf16>
    %93 = vector.shape_cast %92 : vector<1x128x128xbf16> to vector<128x128xbf16>
    %cst_102 = arith.constant dense<0.000000e+00> : vector<46x128xf32>
    %94 = tpu.matmul %91, %93, %cst_102 {dimension_numbers = #tpu.dot_dimension_numbers<[1], [0], [0], [1], [0, 0, 1, 1], [], []>} : vector<46x128xbf16>, vector<128x128xbf16>, vector<46x128xf32> -> vector<46x128xf32>
    %c0_103 = arith.constant 0 : index
    %c0_104 = arith.constant 0 : index
    %95 = vector.load %arg8[%c0_103, %c0_104] : memref<64x128xf32, #tpu.memory_space<vmem>>, vector<46x128xf32>
    %96 = arith.addf %95, %94 : vector<46x128xf32>
    %c0_105 = arith.constant 0 : index
    %c0_106 = arith.constant 0 : index
    %97 = vector.load %arg8[%c0_105, %c0_106] : memref<64x128xf32, #tpu.memory_space<vmem>>, vector<46x128xf32>
    tpu.vector_store %arg8[%c0_105, %c0_106], %96 {strides = array<i32>} : memref<64x128xf32, #tpu.memory_space<vmem>>, vector<46x128xf32>,
    %c17 = arith.constant 17 : index
    %c0_107 = arith.constant 0 : index
    %98 = vector.load %arg7[%c17, %c0_107] : memref<64x128xf32, #tpu.memory_space<vmem>>, vector<46x128xf32>
    %99 = arith.truncf %98 : vector<46x128xf32> to vector<46x128xbf16>
    %c7 = arith.constant 7 : index
    %c0_108 = arith.constant 0 : index
    %c0_109 = arith.constant 0 : index
    %100 = vector.load %arg3[%c7, %c0_108, %c0_109] : memref<9x128x128xbf16, #tpu.memory_space<vmem>>, vector<1x128x128xbf16>
    %101 = vector.shape_cast %100 : vector<1x128x128xbf16> to vector<128x128xbf16>
    %cst_110 = arith.constant dense<0.000000e+00> : vector<46x128xf32>
    %102 = tpu.matmul %99, %101, %cst_110 {dimension_numbers = #tpu.dot_dimension_numbers<[1], [0], [0], [1], [0, 0, 1, 1], [], []>} : vector<46x128xbf16>, vector<128x128xbf16>, vector<46x128xf32> -> vector<46x128xf32>
    %c0_111 = arith.constant 0 : index
    %c0_112 = arith.constant 0 : index
    %103 = vector.load %arg8[%c0_111, %c0_112] : memref<64x128xf32, #tpu.memory_space<vmem>>, vector<46x128xf32>
    %104 = arith.addf %103, %102 : vector<46x128xf32>
    %c0_113 = arith.constant 0 : index
    %c0_114 = arith.constant 0 : index
    %105 = vector.load %arg8[%c0_113, %c0_114] : memref<64x128xf32, #tpu.memory_space<vmem>>, vector<46x128xf32>
    tpu.vector_store %arg8[%c0_113, %c0_114], %104 {strides = array<i32>} : memref<64x128xf32, #tpu.memory_space<vmem>>, vector<46x128xf32>,
    %c18 = arith.constant 18 : index
    %c0_115 = arith.constant 0 : index
    %106 = vector.load %arg7[%c18, %c0_115] : memref<64x128xf32, #tpu.memory_space<vmem>>, vector<46x128xf32>
    %107 = arith.truncf %106 : vector<46x128xf32> to vector<46x128xbf16>
    %c8_116 = arith.constant 8 : index
    %c0_117 = arith.constant 0 : index
    %c0_118 = arith.constant 0 : index
    %108 = vector.load %arg3[%c8_116, %c0_117, %c0_118] : memref<9x128x128xbf16, #tpu.memory_space<vmem>>, vector<1x128x128xbf16>
    %109 = vector.shape_cast %108 : vector<1x128x128xbf16> to vector<128x128xbf16>
    %cst_119 = arith.constant dense<0.000000e+00> : vector<46x128xf32>
    %110 = tpu.matmul %107, %109, %cst_119 {dimension_numbers = #tpu.dot_dimension_numbers<[1], [0], [0], [1], [0, 0, 1, 1], [], []>} : vector<46x128xbf16>, vector<128x128xbf16>, vector<46x128xf32> -> vector<46x128xf32>
    %c0_120 = arith.constant 0 : index
    %c0_121 = arith.constant 0 : index
    %111 = vector.load %arg8[%c0_120, %c0_121] : memref<64x128xf32, #tpu.memory_space<vmem>>, vector<46x128xf32>
    %112 = arith.addf %111, %110 : vector<46x128xf32>
    %c0_122 = arith.constant 0 : index
    %c0_123 = arith.constant 0 : index
    %113 = vector.load %arg8[%c0_122, %c0_123] : memref<64x128xf32, #tpu.memory_space<vmem>>, vector<46x128xf32>
    tpu.vector_store %arg8[%c0_122, %c0_123], %112 {strides = array<i32>} : memref<64x128xf32, #tpu.memory_space<vmem>>, vector<46x128xf32>,
    %c0_124 = arith.constant 0 : index
    %c0_125 = arith.constant 0 : index
    %114 = vector.load %arg8[%c0_124, %c0_125] : memref<64x128xf32, #tpu.memory_space<vmem>>, vector<46x128xf32>
    %cst_126 = arith.constant 0.000000e+00 : f32
    %115 = vector.broadcast %cst_126 : f32 to vector<46x128xf32>
    %116 = arith.maximumf %114, %115 : vector<46x128xf32>
    %c0_127 = arith.constant 0 : index
    %c0_128 = arith.constant 0 : index
    %117 = vector.load %arg8[%c0_127, %c0_128] : memref<64x128xf32, #tpu.memory_space<vmem>>, vector<46x128xf32>
    tpu.vector_store %arg8[%c0_127, %c0_128], %116 {strides = array<i32>} : memref<64x128xf32, #tpu.memory_space<vmem>>, vector<46x128xf32>,
    %c0_129 = arith.constant 0 : index
    %c0_130 = arith.constant 0 : index
    %118 = vector.load %arg8[%c0_129, %c0_130] : memref<64x128xf32, #tpu.memory_space<vmem>>, vector<5x8xf32>
    %119 = arith.truncf %118 : vector<5x8xf32> to vector<5x8xbf16>
    %c0_131 = arith.constant 0 : index
    %c0_132 = arith.constant 0 : index
    %c0_133 = arith.constant 0 : index
    %c0_134 = arith.constant 0 : index
    %120 = vector.load %arg6[%c0_131, %c0_132, %c0_133, %c0_134] : memref<1x5x5x8xbf16, #tpu.memory_space<vmem>>, vector<1x1x5x8xbf16>
    %121 = vector.shape_cast %120 : vector<1x1x5x8xbf16> to vector<5x8xbf16>
    %122 = vector.shape_cast %119 : vector<5x8xbf16> to vector<1x1x5x8xbf16>
    tpu.vector_store %arg6[%c0_131, %c0_132, %c0_133, %c0_134], %122 {strides = array<i32>} : memref<1x5x5x8xbf16, #tpu.memory_space<vmem>>, vector<1x1x5x8xbf16>,
    %c8_135 = arith.constant 8 : index
    %c0_136 = arith.constant 0 : index
    %123 = vector.load %arg8[%c8_135, %c0_136] : memref<64x128xf32, #tpu.memory_space<vmem>>, vector<5x8xf32>
    %124 = arith.truncf %123 : vector<5x8xf32> to vector<5x8xbf16>
    %c0_137 = arith.constant 0 : index
    %c1_138 = arith.constant 1 : index
    %c0_139 = arith.constant 0 : index
    %c0_140 = arith.constant 0 : index
    %125 = vector.load %arg6[%c0_137, %c1_138, %c0_139, %c0_140] : memref<1x5x5x8xbf16, #tpu.memory_space<vmem>>, vector<1x1x5x8xbf16>
    %126 = vector.shape_cast %125 : vector<1x1x5x8xbf16> to vector<5x8xbf16>
    %127 = vector.shape_cast %124 : vector<5x8xbf16> to vector<1x1x5x8xbf16>
    tpu.vector_store %arg6[%c0_137, %c1_138, %c0_139, %c0_140], %127 {strides = array<i32>} : memref<1x5x5x8xbf16, #tpu.memory_space<vmem>>, vector<1x1x5x8xbf16>,
    %c16_141 = arith.constant 16 : index
    %c0_142 = arith.constant 0 : index
    %128 = vector.load %arg8[%c16_141, %c0_142] : memref<64x128xf32, #tpu.memory_space<vmem>>, vector<5x8xf32>
    %129 = arith.truncf %128 : vector<5x8xf32> to vector<5x8xbf16>
    %c0_143 = arith.constant 0 : index
    %c2_144 = arith.constant 2 : index
    %c0_145 = arith.constant 0 : index
    %c0_146 = arith.constant 0 : index
    %130 = vector.load %arg6[%c0_143, %c2_144, %c0_145, %c0_146] : memref<1x5x5x8xbf16, #tpu.memory_space<vmem>>, vector<1x1x5x8xbf16>
    %131 = vector.shape_cast %130 : vector<1x1x5x8xbf16> to vector<5x8xbf16>
    %132 = vector.shape_cast %129 : vector<5x8xbf16> to vector<1x1x5x8xbf16>
    tpu.vector_store %arg6[%c0_143, %c2_144, %c0_145, %c0_146], %132 {strides = array<i32>} : memref<1x5x5x8xbf16, #tpu.memory_space<vmem>>, vector<1x1x5x8xbf16>,
    %c24 = arith.constant 24 : index
    %c0_147 = arith.constant 0 : index
    %133 = vector.load %arg8[%c24, %c0_147] : memref<64x128xf32, #tpu.memory_space<vmem>>, vector<5x8xf32>
    %134 = arith.truncf %133 : vector<5x8xf32> to vector<5x8xbf16>
    %c0_148 = arith.constant 0 : index
    %c3_149 = arith.constant 3 : index
    %c0_150 = arith.constant 0 : index
    %c0_151 = arith.constant 0 : index
    %135 = vector.load %arg6[%c0_148, %c3_149, %c0_150, %c0_151] : memref<1x5x5x8xbf16, #tpu.memory_space<vmem>>, vector<1x1x5x8xbf16>
    %136 = vector.shape_cast %135 : vector<1x1x5x8xbf16> to vector<5x8xbf16>
    %137 = vector.shape_cast %134 : vector<5x8xbf16> to vector<1x1x5x8xbf16>
    tpu.vector_store %arg6[%c0_148, %c3_149, %c0_150, %c0_151], %137 {strides = array<i32>} : memref<1x5x5x8xbf16, #tpu.memory_space<vmem>>, vector<1x1x5x8xbf16>,
    %c32 = arith.constant 32 : index
    %c0_152 = arith.constant 0 : index
    %138 = vector.load %arg8[%c32, %c0_152] : memref<64x128xf32, #tpu.memory_space<vmem>>, vector<5x8xf32>
    %139 = arith.truncf %138 : vector<5x8xf32> to vector<5x8xbf16>
    %c0_153 = arith.constant 0 : index
    %c4_154 = arith.constant 4 : index
    %c0_155 = arith.constant 0 : index
    %c0_156 = arith.constant 0 : index
    %140 = vector.load %arg6[%c0_153, %c4_154, %c0_155, %c0_156] : memref<1x5x5x8xbf16, #tpu.memory_space<vmem>>, vector<1x1x5x8xbf16>
    %141 = vector.shape_cast %140 : vector<1x1x5x8xbf16> to vector<5x8xbf16>
    %142 = vector.shape_cast %139 : vector<5x8xbf16> to vector<1x1x5x8xbf16>
    tpu.vector_store %arg6[%c0_153, %c4_154, %c0_155, %c0_156], %142 {strides = array<i32>} : memref<1x5x5x8xbf16, #tpu.memory_space<vmem>>, vector<1x1x5x8xbf16>,
    return
  }
  func.func @transform_0(%arg0: i32) -> (i32, i32, i32) {
    %c0_i32 = arith.constant 0 : i32
    %c0_i32_0 = arith.constant 0 : i32
    %c0_i32_1 = arith.constant 0 : i32
    return %arg0, %c0_i32, %c0_i32_0 : i32, i32, i32
  }
  func.func @transform_1(%arg0: i32) -> (i32, i32, i32) {
    %c0_i32 = arith.constant 0 : i32
    %c0_i32_0 = arith.constant 0 : i32
    %c0_i32_1 = arith.constant 0 : i32
    %c0_i32_2 = arith.constant 0 : i32
    return %c0_i32, %c0_i32_0, %c0_i32_1 : i32, i32, i32
  }
  func.func @transform_2(%arg0: i32) -> (i32, i32, i32) {
    %c0_i32 = arith.constant 0 : i32
    %c0_i32_0 = arith.constant 0 : i32
    %c0_i32_1 = arith.constant 0 : i32
    %c0_i32_2 = arith.constant 0 : i32
    return %c0_i32, %c0_i32_0, %c0_i32_1 : i32, i32, i32
  }
  func.func @transform_3(%arg0: i32) -> (i32, i32) {
    %c0_i32 = arith.constant 0 : i32
    %c0_i32_0 = arith.constant 0 : i32
    %c0_i32_1 = arith.constant 0 : i32
    return %c0_i32, %c0_i32_0 : i32, i32
  }
  func.func @transform_4(%arg0: i32) -> (i32, i32) {
    %c0_i32 = arith.constant 0 : i32
    %c0_i32_0 = arith.constant 0 : i32
    %c0_i32_1 = arith.constant 0 : i32
    return %c0_i32, %c0_i32_0 : i32, i32
  }
  func.func @transform_5(%arg0: i32) -> (i32, i32, i32, i32) {
    %c0_i32 = arith.constant 0 : i32
    %c0_i32_0 = arith.constant 0 : i32
    %c0_i32_1 = arith.constant 0 : i32
    %c0_i32_2 = arith.constant 0 : i32
    return %arg0, %c0_i32, %c0_i32_0, %c0_i32_1 : i32, i32, i32, i32
  }
}

module attributes {stable_mosaic.version = 11 : i64} {
  func.func @_mlp_head_kernel(%arg0: i32, %arg1: memref<2x200xbf16, #tpu.memory_space<vmem>>, %arg2: memref<2x4xf32, #tpu.memory_space<vmem>>, %arg3: memref<200x32xbf16, #tpu.memory_space<vmem>>, %arg4: memref<1x32xf32, #tpu.memory_space<vmem>>, %arg5: memref<1x32xf32, #tpu.memory_space<vmem>>, %arg6: memref<1x32xf32, #tpu.memory_space<vmem>>, %arg7: memref<32x32xbf16, #tpu.memory_space<vmem>>, %arg8: memref<1x32xf32, #tpu.memory_space<vmem>>, %arg9: memref<32x32xbf16, #tpu.memory_space<vmem>>, %arg10: memref<1x32xf32, #tpu.memory_space<vmem>>, %arg11: memref<32x8xbf16, #tpu.memory_space<vmem>>, %arg12: memref<1x8xf32, #tpu.memory_space<vmem>>, %arg13: memref<2x128xf32, #tpu.memory_space<vmem>>) attributes {dimension_semantics = [#tpu.dimension_semantics<parallel>], iteration_bounds = array<i64: 1>, scalar_prefetch = 0 : i64, scratch_operands = 0 : i64, tpu.core_type = #tpu.core_type<tc>, window_params = [{transform_indices = @transform_0, window_bounds = array<i64: 2, 200>}, {transform_indices = @transform_1, window_bounds = array<i64: 2, 4>}, {pipeline_mode = #tpu.pipeline_mode<synchronous>, transform_indices = @transform_2, window_bounds = array<i64: 200, 32>}, {pipeline_mode = #tpu.pipeline_mode<synchronous>, transform_indices = @transform_3, window_bounds = array<i64: 1, 32>}, {pipeline_mode = #tpu.pipeline_mode<synchronous>, transform_indices = @transform_4, window_bounds = array<i64: 1, 32>}, {pipeline_mode = #tpu.pipeline_mode<synchronous>, transform_indices = @transform_5, window_bounds = array<i64: 1, 32>}, {pipeline_mode = #tpu.pipeline_mode<synchronous>, transform_indices = @transform_6, window_bounds = array<i64: 32, 32>}, {pipeline_mode = #tpu.pipeline_mode<synchronous>, transform_indices = @transform_7, window_bounds = array<i64: 1, 32>}, {pipeline_mode = #tpu.pipeline_mode<synchronous>, transform_indices = @transform_8, window_bounds = array<i64: 32, 32>}, {pipeline_mode = #tpu.pipeline_mode<synchronous>, transform_indices = @transform_9, window_bounds = array<i64: 1, 32>}, {pipeline_mode = #tpu.pipeline_mode<synchronous>, transform_indices = @transform_10, window_bounds = array<i64: 32, 8>}, {pipeline_mode = #tpu.pipeline_mode<synchronous>, transform_indices = @transform_11, window_bounds = array<i64: 1, 8>}, {transform_indices = @transform_12, window_bounds = array<i64: 2, 128>}]} {
    %c0 = arith.constant 0 : index
    %c0_0 = arith.constant 0 : index
    %0 = vector.load %arg1[%c0, %c0_0] : memref<2x200xbf16, #tpu.memory_space<vmem>>, vector<2x200xbf16>
    %c0_1 = arith.constant 0 : index
    %c0_2 = arith.constant 0 : index
    %1 = vector.load %arg3[%c0_1, %c0_2] : memref<200x32xbf16, #tpu.memory_space<vmem>>, vector<200x32xbf16>
    %cst = arith.constant dense<0.000000e+00> : vector<2x32xf32>
    %2 = tpu.matmul %0, %1, %cst {dimension_numbers = #tpu.dot_dimension_numbers<[1], [0], [0], [1], [0, 0, 1, 1], [], []>} : vector<2x200xbf16>, vector<200x32xbf16>, vector<2x32xf32> -> vector<2x32xf32>
    %c0_3 = arith.constant 0 : index
    %c0_4 = arith.constant 0 : index
    %3 = vector.load %arg4[%c0_3, %c0_4] : memref<1x32xf32, #tpu.memory_space<vmem>>, vector<1x32xf32>
    %4 = vector.broadcast %3 : vector<1x32xf32> to vector<2x32xf32>
    %5 = arith.addf %2, %4 : vector<2x32xf32>
    %cst_5 = arith.constant dense<0.000000e+00> : vector<2xf32>
    %6 = vector.multi_reduction <add>, %5, %cst_5 [1] : vector<2x32xf32> to vector<2xf32>
    %7 = vector.shape_cast %6 : vector<2xf32> to vector<2x1xf32>
    %cst_6 = arith.constant 3.200000e+01 : f32
    %8 = vector.broadcast %cst_6 : f32 to vector<2x1xf32>
    %9 = arith.divf %7, %8 : vector<2x1xf32>
    %10 = vector.broadcast %9 : vector<2x1xf32> to vector<2x32xf32>
    %11 = arith.subf %5, %10 : vector<2x32xf32>
    %12 = arith.mulf %11, %11 : vector<2x32xf32>
    %cst_7 = arith.constant dense<0.000000e+00> : vector<2xf32>
    %13 = vector.multi_reduction <add>, %12, %cst_7 [1] : vector<2x32xf32> to vector<2xf32>
    %14 = vector.shape_cast %13 : vector<2xf32> to vector<2x1xf32>
    %cst_8 = arith.constant 3.200000e+01 : f32
    %15 = vector.broadcast %cst_8 : f32 to vector<2x1xf32>
    %16 = arith.divf %14, %15 : vector<2x1xf32>
    %17 = vector.broadcast %9 : vector<2x1xf32> to vector<2x32xf32>
    %18 = arith.subf %5, %17 : vector<2x32xf32>
    %cst_9 = arith.constant 9.99999974E-6 : f32
    %19 = vector.broadcast %cst_9 : f32 to vector<2x1xf32>
    %20 = arith.addf %16, %19 : vector<2x1xf32>
    %21 = math.rsqrt %20 : vector<2x1xf32>
    %22 = vector.broadcast %21 : vector<2x1xf32> to vector<2x32xf32>
    %23 = arith.mulf %18, %22 : vector<2x32xf32>
    %c0_10 = arith.constant 0 : index
    %c0_11 = arith.constant 0 : index
    %24 = vector.load %arg5[%c0_10, %c0_11] : memref<1x32xf32, #tpu.memory_space<vmem>>, vector<1x32xf32>
    %25 = vector.broadcast %24 : vector<1x32xf32> to vector<2x32xf32>
    %26 = arith.mulf %23, %25 : vector<2x32xf32>
    %c0_12 = arith.constant 0 : index
    %c0_13 = arith.constant 0 : index
    %27 = vector.load %arg6[%c0_12, %c0_13] : memref<1x32xf32, #tpu.memory_space<vmem>>, vector<1x32xf32>
    %28 = vector.broadcast %27 : vector<1x32xf32> to vector<2x32xf32>
    %29 = arith.addf %26, %28 : vector<2x32xf32>
    %30 = math.tanh %29 : vector<2x32xf32>
    %31 = arith.truncf %30 : vector<2x32xf32> to vector<2x32xbf16>
    %c0_14 = arith.constant 0 : index
    %c0_15 = arith.constant 0 : index
    %32 = vector.load %arg7[%c0_14, %c0_15] : memref<32x32xbf16, #tpu.memory_space<vmem>>, vector<32x32xbf16>
    %cst_16 = arith.constant dense<0.000000e+00> : vector<2x32xf32>
    %33 = tpu.matmul %31, %32, %cst_16 {dimension_numbers = #tpu.dot_dimension_numbers<[1], [0], [0], [1], [0, 0, 1, 1], [], []>} : vector<2x32xbf16>, vector<32x32xbf16>, vector<2x32xf32> -> vector<2x32xf32>
    %c0_17 = arith.constant 0 : index
    %c0_18 = arith.constant 0 : index
    %34 = vector.load %arg8[%c0_17, %c0_18] : memref<1x32xf32, #tpu.memory_space<vmem>>, vector<1x32xf32>
    %35 = vector.broadcast %34 : vector<1x32xf32> to vector<2x32xf32>
    %36 = arith.addf %33, %35 : vector<2x32xf32>
    %cst_19 = arith.constant 0.000000e+00 : f32
    %37 = vector.broadcast %cst_19 : f32 to vector<2x32xf32>
    %38 = arith.maximumf %36, %37 : vector<2x32xf32>
    %39 = arith.truncf %38 : vector<2x32xf32> to vector<2x32xbf16>
    %c0_20 = arith.constant 0 : index
    %c0_21 = arith.constant 0 : index
    %40 = vector.load %arg9[%c0_20, %c0_21] : memref<32x32xbf16, #tpu.memory_space<vmem>>, vector<32x32xbf16>
    %cst_22 = arith.constant dense<0.000000e+00> : vector<2x32xf32>
    %41 = tpu.matmul %39, %40, %cst_22 {dimension_numbers = #tpu.dot_dimension_numbers<[1], [0], [0], [1], [0, 0, 1, 1], [], []>} : vector<2x32xbf16>, vector<32x32xbf16>, vector<2x32xf32> -> vector<2x32xf32>
    %c0_23 = arith.constant 0 : index
    %c0_24 = arith.constant 0 : index
    %42 = vector.load %arg10[%c0_23, %c0_24] : memref<1x32xf32, #tpu.memory_space<vmem>>, vector<1x32xf32>
    %43 = vector.broadcast %42 : vector<1x32xf32> to vector<2x32xf32>
    %44 = arith.addf %41, %43 : vector<2x32xf32>
    %cst_25 = arith.constant 0.000000e+00 : f32
    %45 = vector.broadcast %cst_25 : f32 to vector<2x32xf32>
    %46 = arith.maximumf %44, %45 : vector<2x32xf32>
    %47 = arith.truncf %46 : vector<2x32xf32> to vector<2x32xbf16>
    %c0_26 = arith.constant 0 : index
    %c0_27 = arith.constant 0 : index
    %48 = vector.load %arg11[%c0_26, %c0_27] : memref<32x8xbf16, #tpu.memory_space<vmem>>, vector<32x8xbf16>
    %cst_28 = arith.constant dense<0.000000e+00> : vector<2x8xf32>
    %49 = tpu.matmul %47, %48, %cst_28 {dimension_numbers = #tpu.dot_dimension_numbers<[1], [0], [0], [1], [0, 0, 1, 1], [], []>} : vector<2x32xbf16>, vector<32x8xbf16>, vector<2x8xf32> -> vector<2x8xf32>
    %c0_29 = arith.constant 0 : index
    %c0_30 = arith.constant 0 : index
    %50 = vector.load %arg12[%c0_29, %c0_30] : memref<1x8xf32, #tpu.memory_space<vmem>>, vector<1x8xf32>
    %51 = vector.broadcast %50 : vector<1x8xf32> to vector<2x8xf32>
    %52 = arith.addf %49, %51 : vector<2x8xf32>
    %53 = vector.extract_strided_slice %52 {offsets = [0, 0], sizes = [2, 4], strides = [1, 1]} : vector<2x8xf32> to vector<2x4xf32>
    %54 = vector.extract_strided_slice %52 {offsets = [0, 4], sizes = [2, 4], strides = [1, 1]} : vector<2x8xf32> to vector<2x4xf32>
    %55 = math.tanh %54 : vector<2x4xf32>
    %cst_31 = arith.constant 1.000000e+00 : f32
    %56 = vector.broadcast %cst_31 : f32 to vector<2x4xf32>
    %57 = arith.addf %55, %56 : vector<2x4xf32>
    %cst_32 = arith.constant 6.000000e+00 : f32
    %58 = vector.broadcast %cst_32 : f32 to vector<2x4xf32>
    %59 = arith.mulf %58, %57 : vector<2x4xf32>
    %cst_33 = arith.constant -1.000000e+01 : f32
    %60 = vector.broadcast %cst_33 : f32 to vector<2x4xf32>
    %61 = arith.addf %60, %59 : vector<2x4xf32>
    %c0_34 = arith.constant 0 : index
    %c0_35 = arith.constant 0 : index
    %62 = vector.load %arg2[%c0_34, %c0_35] : memref<2x4xf32, #tpu.memory_space<vmem>>, vector<2x4xf32>
    %63 = math.exp %61 : vector<2x4xf32>
    %64 = arith.mulf %62, %63 : vector<2x4xf32>
    %65 = arith.addf %53, %64 : vector<2x4xf32>
    %cst_36 = arith.constant -5.000000e-01 : f32
    %66 = vector.broadcast %cst_36 : f32 to vector<2x4xf32>
    %67 = arith.mulf %66, %62 : vector<2x4xf32>
    %68 = arith.mulf %67, %62 : vector<2x4xf32>
    %69 = arith.subf %68, %61 : vector<2x4xf32>
    %cst_37 = arith.constant dense<0.000000e+00> : vector<2xf32>
    %70 = vector.multi_reduction <add>, %69, %cst_37 [1] : vector<2x4xf32> to vector<2xf32>
    %71 = vector.shape_cast %70 : vector<2xf32> to vector<2x1xf32>
    %cst_38 = arith.constant 3.67575407 : f32
    %72 = vector.broadcast %cst_38 : f32 to vector<2x1xf32>
    %73 = arith.subf %71, %72 : vector<2x1xf32>
    %74 = math.tanh %53 : vector<2x4xf32>
    %75 = math.tanh %65 : vector<2x4xf32>
    %76 = arith.mulf %75, %75 : vector<2x4xf32>
    %cst_39 = arith.constant 1.000000e+00 : f32
    %77 = vector.broadcast %cst_39 : f32 to vector<2x4xf32>
    %78 = arith.subf %77, %76 : vector<2x4xf32>
    %cst_40 = arith.constant 0.000000e+00 : f32
    %79 = vector.broadcast %cst_40 : f32 to vector<2x4xf32>
    %80 = arith.maximumf %78, %79 : vector<2x4xf32>
    %cst_41 = arith.constant 9.99999997E-7 : f32
    %81 = vector.broadcast %cst_41 : f32 to vector<2x4xf32>
    %82 = arith.addf %80, %81 : vector<2x4xf32>
    %83 = math.log %82 : vector<2x4xf32>
    %cst_42 = arith.constant dense<0.000000e+00> : vector<2xf32>
    %84 = vector.multi_reduction <add>, %83, %cst_42 [1] : vector<2x4xf32> to vector<2xf32>
    %85 = vector.shape_cast %84 : vector<2xf32> to vector<2x1xf32>
    %86 = arith.subf %73, %85 : vector<2x1xf32>
    %cst_43 = arith.constant 0.000000e+00 : f32
    %87 = vector.broadcast %cst_43 : f32 to vector<2x115xf32>
    %88 = tpu.concatenate %74, %75, %61, %86, %87 in 1 : vector<2x4xf32>, vector<2x4xf32>, vector<2x4xf32>, vector<2x1xf32>, vector<2x115xf32> -> vector<2x128xf32>
    %c0_44 = arith.constant 0 : index
    %c0_45 = arith.constant 0 : index
    %89 = vector.load %arg13[%c0_44, %c0_45] : memref<2x128xf32, #tpu.memory_space<vmem>>, vector<2x128xf32>
    tpu.vector_store %arg13[%c0_44, %c0_45], %88 {strides = array<i32>} : memref<2x128xf32, #tpu.memory_space<vmem>>, vector<2x128xf32>,
    return
  }
  func.func @transform_0(%arg0: i32) -> (i32, i32) {
    %c0_i32 = arith.constant 0 : i32
    %c0_i32_0 = arith.constant 0 : i32
    return %arg0, %c0_i32 : i32, i32
  }
  func.func @transform_1(%arg0: i32) -> (i32, i32) {
    %c0_i32 = arith.constant 0 : i32
    %c0_i32_0 = arith.constant 0 : i32
    return %arg0, %c0_i32 : i32, i32
  }
  func.func @transform_2(%arg0: i32) -> (i32, i32) {
    %c0_i32 = arith.constant 0 : i32
    %c0_i32_0 = arith.constant 0 : i32
    %c0_i32_1 = arith.constant 0 : i32
    return %c0_i32, %c0_i32_0 : i32, i32
  }
  func.func @transform_3(%arg0: i32) -> (i32, i32) {
    %c0_i32 = arith.constant 0 : i32
    %c0_i32_0 = arith.constant 0 : i32
    %c0_i32_1 = arith.constant 0 : i32
    return %c0_i32, %c0_i32_0 : i32, i32
  }
  func.func @transform_4(%arg0: i32) -> (i32, i32) {
    %c0_i32 = arith.constant 0 : i32
    %c0_i32_0 = arith.constant 0 : i32
    %c0_i32_1 = arith.constant 0 : i32
    return %c0_i32, %c0_i32_0 : i32, i32
  }
  func.func @transform_5(%arg0: i32) -> (i32, i32) {
    %c0_i32 = arith.constant 0 : i32
    %c0_i32_0 = arith.constant 0 : i32
    %c0_i32_1 = arith.constant 0 : i32
    return %c0_i32, %c0_i32_0 : i32, i32
  }
  func.func @transform_6(%arg0: i32) -> (i32, i32) {
    %c0_i32 = arith.constant 0 : i32
    %c0_i32_0 = arith.constant 0 : i32
    %c0_i32_1 = arith.constant 0 : i32
    return %c0_i32, %c0_i32_0 : i32, i32
  }
  func.func @transform_7(%arg0: i32) -> (i32, i32) {
    %c0_i32 = arith.constant 0 : i32
    %c0_i32_0 = arith.constant 0 : i32
    %c0_i32_1 = arith.constant 0 : i32
    return %c0_i32, %c0_i32_0 : i32, i32
  }
  func.func @transform_8(%arg0: i32) -> (i32, i32) {
    %c0_i32 = arith.constant 0 : i32
    %c0_i32_0 = arith.constant 0 : i32
    %c0_i32_1 = arith.constant 0 : i32
    return %c0_i32, %c0_i32_0 : i32, i32
  }
  func.func @transform_9(%arg0: i32) -> (i32, i32) {
    %c0_i32 = arith.constant 0 : i32
    %c0_i32_0 = arith.constant 0 : i32
    %c0_i32_1 = arith.constant 0 : i32
    return %c0_i32, %c0_i32_0 : i32, i32
  }
  func.func @transform_10(%arg0: i32) -> (i32, i32) {
    %c0_i32 = arith.constant 0 : i32
    %c0_i32_0 = arith.constant 0 : i32
    %c0_i32_1 = arith.constant 0 : i32
    return %c0_i32, %c0_i32_0 : i32, i32
  }
  func.func @transform_11(%arg0: i32) -> (i32, i32) {
    %c0_i32 = arith.constant 0 : i32
    %c0_i32_0 = arith.constant 0 : i32
    %c0_i32_1 = arith.constant 0 : i32
    return %c0_i32, %c0_i32_0 : i32, i32
  }
  func.func @transform_12(%arg0: i32) -> (i32, i32) {
    %c0_i32 = arith.constant 0 : i32
    %c0_i32_0 = arith.constant 0 : i32
    return %arg0, %c0_i32 : i32, i32
  }
}

</mosaic_0001>

<bundles_post_ra>
// kernel: actor_forward.3
= control target key start
LH: loop header
LB: loop body
LE: loop exit
PB: predicated region body
PF: predicated region fallthrough
CT: control target
= control target key end

     0   :  { %v615_v0 = vmov 0   ;;  %v616_v3 = vmov 1966171168   ;;  %v87_v5 = vlaneseq  ;;  %vm174_vm0 = vcmask 588800   ;;  %s778_s2 = inlined_call_operand.vmem [shape: bf16[200,32], index: 2, kind: input, shape index: {}]   ;;  %s779_s0 = inlined_call_operand.vmem [shape: bf16[2,200], index: 0, kind: input, shape index: {}]   ;;  %s780_s3 = inlined_call_operand.vmem [shape: f32[1,32], index: 3, kind: input, shape index: {}]   ;;  %s781_s6 = inlined_call_operand.vmem [shape: bf16[32,32], index: 6, kind: input, shape index: {}]   ;;  %s782_s8 = inlined_call_operand.vmem [shape: bf16[32,32], index: 8, kind: input, shape index: {}]   ;;  %s783_s4 = inlined_call_operand.vmem [shape: f32[1,32], index: 4, kind: input, shape index: {}]   ;;  %s784_s5 = inlined_call_operand.vmem [shape: f32[1,32], index: 5, kind: input, shape index: {}]   ;;  %s785_s10 = inlined_call_operand.vmem [shape: bf16[32,8], index: 10, kind: input, shape index: {}]   ;;  %s786_s7 = inlined_call_operand.vmem [shape: f32[1,32], index: 7, kind: input, shape index: {}]   ;;  %s787_s9 = inlined_call_operand.vmem [shape: f32[1,32], index: 9, kind: input, shape index: {}]   ;;  %s788_s11 = inlined_call_operand.vmem [shape: f32[1,8], index: 11, kind: input, shape index: {}]   ;;  %s789_s1 = inlined_call_operand.vmem [shape: f32[2,4], index: 1, kind: input, shape index: {}]   ;;  %s790_s12 = inlined_call_operand.vmem [shape: f32[2,128], index: 12, kind: output, shape index: {}]  }
   0x1   :  { %182 = vmatprep.subr.bf16.mxu0 %v615_v0  ;;  %v584_v1 = vld [vmem:[%s778_s2] sm:$0xff]   ;;  %v585_v2 = vld [vmem:[%s778_s2 + $0x8] sm:$0xff]   ;;  %v85_v4 = vunpack.c.l.s4 %v616_v3  ;;  %v586_v6 = vld [vmem:[%s778_s2 + $0x10] sm:$0xff]   ;;  %vm178_vm1 = vcmask 1043456   ;;  %vm222_vm2 = vcmask 254976   ;;  %v617_v37 = vmov 0.0  }
   0x2   :  { %183 = vmatpush1.bf16.msra.mxu0 %v584_v1  ;;  %v88_v8 = vshrl.u32 %v87_v5, 7  ;;  %v587_v9 = vld [vmem:[%s778_s2 + $0x18] sm:$0xff]   ;;  %v515_v11 = vld.sshfl [vmem:[%s779_s0] sm:$0x11 pattern:$0x75316420]  ;;  %554 = vmatprep.subr.bf16.mxu1 %v617_v37 }
   0x3   :  { %184 = vmatprep.subr.bf16.mxu0 %v615_v0  ;;  %v86_v7 = vunpack.c.0.s8 %v85_v4  ;;  %v588_v12 = vld [vmem:[%s778_s2 + $0x20] sm:$0xff]   ;;  %v83_v13 = vcombine.high %v515_v11, %v515_v11  ;;  %v589_v15 = vld [vmem:[%s778_s2 + $0x28] sm:$0xff]   ;;  %v590_v16 = vld [vmem:[%s778_s2 + $0x30] sm:$0xff]   ;;  %vm618_vm3 = vmmov 0   ;;  %vm278_vm4 = vcmask 261120  }
   0x4   :  { %v591_v17 = vld [vmem:[%s778_s2 + $0x38] sm:$0xff]   ;;  %v592_v18 = vld [vmem:[%s778_s2 + $0x40] sm:$0xff]   ;;  %v593_v19 = vld [vmem:[%s778_s2 + $0x48] sm:$0xff]   ;;  %558 = vmatprep.mubr.msk.bf16.mxu1 %vm618_vm3, %v617_v37  ;;  %vm478_vm5 = vcmask 25600   ;;  %vm501_vm6 = vcmask 31744   ;;  %vm503_vm7 = vcmask 64512  }
   0x5   :  { %v89_v10 = vsub.s32 %v86_v7, %v88_v8  ;;  %v594_v20 = vld [vmem:[%s778_s2 + $0x50] sm:$0xff]   ;;  %v595_v21 = vld [vmem:[%s778_s2 + $0x58] sm:$0xff]   ;;  %v596_v22 = vld [vmem:[%s778_s2 + $0x60] ss:$0 sps:$4 sm:$0xff]   ;;  %vm505_vm8 = vcmask 97280   ;;  %vm507_vm9 = vcmask 105472  }
   0x6   :  { %185 = vmatpush1.bf16.msra.mxu0 %v585_v2  ;;  %v180_v23 = vsel %vm178_vm1, %v596_v22, 0  ;;  %v514_v25 = vld [vmem:[%s780_s3] ss:$0 sm:$0xff]  ;;  %v598_v39 = vld [vmem:[%s781_s6 + $0x8] sm:$0xff]  }
   0x7   :  { %186 = vmatprep.subr.bf16.mxu0 %v615_v0  ;;  %v97_v14 = vrot.slane %v83_v13, %v89_v10  ;;  %v90_v24 = vrot.slane %v515_v11, %v89_v10  ;;  %v597_v38 = vld [vmem:[%s781_s6] sm:$0xff]   ;;  %v600_v52 = vld [vmem:[%s782_s8 + $0x8] sm:$0xff]  }
   0x8   :  { %555 = vmatpush3.bf16.msra.mxu1 %v597_v38  ;;  %v530_v44 = vld [vmem:[%s783_s4] ss:$0 sm:$0xff]  ;;  %v602_v62 = vld [vmem:[%s785_s10 + $0x8] sm:$0xff]  }
   0x9   :  { %529 = vmatprep.mubr.msk.bf16.mxu0 %vm174_vm0, %v97_v14  ;;  %556 = vmatprep.subr.bf16.mxu1 %v617_v37  ;;  %v531_v46 = vld [vmem:[%s784_s5] ss:$0 sm:$0xff] }
   0xa   :  { %187 = vmatpush1.bf16.msra.mxu0 %v586_v6  ;;  %v599_v50 = vld [vmem:[%s782_s8] sm:$0xff]  }
   0xb   :  { %188 = vmatprep.subr.bf16.mxu0 %v615_v0  ;;  %v532_v53 = vld [vmem:[%s786_s7] ss:$0 sm:$0xff] }
   0xc   :  { %557 = vmatpush3.bf16.msra.mxu1 %v598_v39  ;;  %v601_v60 = vld [vmem:[%s785_s10] sm:$0xff]  }
   0xd   :  { %562 = vmatprep.subr.bf16.mxu1 %v617_v37  ;;  %v536_v63 = vld [vmem:[%s787_s9] ss:$0 sm:$0xff]  ;;  %s619_s9 = smov 124  }
   0xe   :  { %189 = vmatpush1.bf16.msra.mxu0 %v587_v9  ;;  %v540_v7 = vld [vmem:[%s788_s11] ss:$0 sm:$0xff]  ;;  %s620_s11 = smov 4  }
   0xf   :  { %190 = vmatprep.subr.bf16.mxu0 %v615_v0 }
  0x12   :  { %191 = vmatpush1.bf16.msra.mxu0 %v588_v12 }
  0x13   :  { %192 = vmatprep.subr.bf16.mxu0 %v615_v0 }
  0x16   :  { %193 = vmatpush1.bf16.msra.mxu0 %v589_v15 }
  0x17   :  { %194 = vmatprep.subr.bf16.mxu0 %v615_v0 }
  0x1a   :  { %195 = vmatpush1.bf16.msra.mxu0 %v590_v16 }
  0x1b   :  { %196 = vmatprep.subr.bf16.mxu0 %v615_v0 }
  0x1e   :  { %197 = vmatpush1.bf16.msra.mxu0 %v591_v17 }
  0x1f   :  { %198 = vmatprep.subr.bf16.mxu0 %v615_v0 }
  0x22   :  { %199 = vmatpush1.bf16.msra.mxu0 %v592_v18 }
  0x23   :  { %200 = vmatprep.subr.bf16.mxu0 %v615_v0 }
  0x26   :  { %201 = vmatpush1.bf16.msra.mxu0 %v593_v19  ;;  %v462_v19 = vld [vmem:[%s789_s1] sm:$0x3] }
  0x27   :  { %202 = vmatprep.subr.bf16.mxu0 %v615_v0 }
  0x2a   :  { %203 = vmatpush1.bf16.msra.mxu0 %v594_v20  ;;  %v471_v20 = vmul.f32 -0.5, %v462_v19 }
  0x2b   :  { %204 = vmatprep.subr.bf16.mxu0 %v615_v0 }
  0x2e   :  { %205 = vmatpush1.bf16.msra.mxu0 %v595_v21 }
  0x2f   :  { %206 = vmatprep.subr.bf16.mxu0 %v615_v0 }
  0x32   :  { %207 = vmatpush1.bf16.msra.mxu0 %v180_v23  ;;  %v472_v23 = vmul.f32 %v471_v20, %v462_v19 }
  0x35   :  { %215 = vmatmul.mubr.bf16.vlgmr.msra.gmra.mrb[0].mxu0 %v90_v24 }
 0x108   :  { %v216_v26 = vpop.f32.mrb[0].mxu0 }
 0x109   :  { %v217_v27 = vadd.f32 %v514_v25, %v216_v26  ;;  %v218_v28 = vpop.f32.mrb[1].mxu0 }
 0x10a   :  { %v219_v29 = vpop.f32.mrb[2].mxu0 }
 0x10b   :  { %v220_v30 = vpop.f32.mrb[3].mxu0  ;;  %v223_v31 = vsel %vm222_vm2, %v217_v27, 0.0 }
 0x10c   :  { %224 = vadd.xlane.f32.xlu0 %v223_v31 }
 0x199   :  { %v225_v32 = vpop.xlane.xlu0 %224 }
 0x19a   :  { %v227_v33 = vmul.f32 0.03125, %v225_v32 }
 0x19c   :  { %v228_v34 = vsub.f32 %v217_v27, %v227_v33 }
 0x19e   :  { %v229_v35 = vmul.f32 %v228_v34, %v228_v34 }
 0x1a0   :  { %v230_v36 = vsel %vm222_vm2, %v229_v35, 0.0 }
 0x1a1   :  { %231 = vadd.xlane.f32.xlu0 %v230_v36 }
 0x22e   :  { %v232_v40 = vpop.xlane.xlu0 %231 }
 0x22f   :  { %v233_v41 = vmul.f32 0.03125, %v232_v40 }
 0x231   :  { %v234_v42 = vadd.f32 1e-05, %v233_v41 }
 0x233   :  { %603 = vrsqrt.f32 %v234_v42 }
 0x23d   :  { %v604_v43 = vpop.eup %603 }
 0x23e   :  { %v236_v45 = vmul.f32 %v604_v43, %v228_v34 }
 0x240   :  { %v244_v47 = vmul.f32 %v530_v44, %v236_v45 }
 0x242   :  { %v252_v48 = vadd.f32 %v531_v46, %v244_v47 }
 0x244   :  { %605 = vtanh.f32 %v252_v48 }
 0x24e   :  { %v606_v49 = vpop.eup %605 }
 0x24f   :  { %v254_v51 = vpack.c.bf16 %v606_v49, %v606_v49 }
 0x251   :  { %559 = vmatmul.mubr.msk.bf16.vlgmr.msra.gmra.mrb[0].mxu1 %vm278_vm4, %v254_v51 }
 0x252   :  { %563 = vmatpush3.bf16.msra.mxu1 %v599_v50  ;;  %566 = vmatprep.mubr.msk.bf16.mxu1 %vm618_vm3, %v617_v37 }
 0x253   :  { %564 = vmatprep.subr.bf16.mxu1 %v617_v37 }
 0x256   :  { %565 = vmatpush3.bf16.msra.mxu1 %v600_v52 }
 0x257   :  { %570 = vmatprep.subr.bf16.mxu1 %v617_v37 }
 0x324   :  { %v316_v54 = vpop.f32.mrb[0].mxu1 }
 0x325   :  { %v317_v55 = vadd.f32 %v532_v53, %v316_v54  ;;  %v560_v56 = vpop.f32.mrb[1].mxu1 }
 0x326   :  { %v319_v57 = vpop.f32.mrb[2].mxu1 }
 0x327   :  { %v322_v58 = vmax.f32 %v317_v55, 0.0  ;;  %v561_v59 = vpop.f32.mrb[3].mxu1 }
 0x329   :  { %v323_v61 = vpack.c.bf16 %v322_v58, %v322_v58 }
 0x32b   :  { %567 = vmatmul.mubr.msk.bf16.vlgmr.msra.gmra.mrb[4].mxu1 %vm278_vm4, %v323_v61 }
 0x32c   :  { %571 = vmatpush3.bf16.msra.mxu1 %v601_v60  ;;  %574 = vmatprep.mubr.msk.bf16.mxu1 %vm618_vm3, %v617_v37 }
 0x32d   :  { %572 = vmatprep.subr.bf16.mxu1 %v617_v37 }
 0x330   :  { %573 = vmatpush3.bf16.msra.mxu1 %v602_v62 }
 0x3fe   :  { %v384_v0 = vpop.f32.mrb[4].mxu1 }
 0x3ff   :  { %v385_v1 = vadd.f32 %v536_v63, %v384_v0  ;;  %v568_v2 = vpop.f32.mrb[5].mxu1 }
 0x400   :  { %v387_v3 = vpop.f32.mrb[6].mxu1 }
 0x401   :  { %v390_v4 = vmax.f32 %v385_v1, 0.0  ;;  %v569_v5 = vpop.f32.mrb[7].mxu1 }
 0x403   :  { %v391_v6 = vpack.c.bf16 %v390_v4, %v390_v4 }
 0x405   :  { %575 = vmatmul.mubr.msk.bf16.vlgmr.msra.gmra.mrb[8].mxu1 %vm278_vm4, %v391_v6 }
 0x4d8   :  { %v452_v8 = vpop.f32.mrb[8].mxu1 }
 0x4d9   :  { %v453_v9 = vadd.f32 %v540_v7, %v452_v8  ;;  %v576_v10 = vpop.f32.mrb[9].mxu1 }
 0x4da   :  { %v455_v11 = vpop.f32.mrb[10].mxu1 }
 0x4db   :  { %607 = vtanh.f32 %v453_v9  ;;  %v577_v12 = vpop.f32.mrb[11].mxu1 }
 0x4e5   :  { %v608_v13 = vpop.eup %607 }
 0x4e6   :  { %v459_v14 = vadd.f32 1.0, %v608_v13 }
 0x4e8   :  { %v460_v15 = vmul.f32 6.0, %v459_v14 }
 0x4ea   :  { %v461_v16 = vadd.f32 -10.0, %v460_v15 }
 0x4ec   :  { %v463_v17 = vmul.f32 1.442695, %v461_v16 }
 0x4ee   :  { %609 = vpow2.f32 %v463_v17 }
 0x4f8   :  { %v610_v18 = vpop.eup %609 }
 0x4f9   :  { %466 = vrot.lane.b32.xlu1 %v610_v18, %s619_s9 }
 0x4fd   :  { %474 = vrot.lane.b32.xlu1 %v461_v16, %s619_s9 }
 0x56b   :  { %v467_v21 = vpop.permute.xlu1 %466 }
 0x56c   :  { %v469_v22 = vmul.f32 %v467_v21, %v462_v19 }
 0x56e   :  { %v470_v24 = vadd.f32 %v469_v22, %v453_v9 }
 0x56f   :  { %v475_v25 = vpop.permute.xlu1 %474 }
 0x570   :  { %611 = vtanh.f32 %v470_v24  ;;  %v477_v26 = vsub.f32 %v472_v23, %v475_v25 }
 0x572   :  { %v479_v27 = vsel %vm478_vm5, %v477_v26, 0.0 }
 0x573   :  { %480 = vadd.xlane.f32.xlu0 %v479_v27 }
 0x57a   :  { %v612_v28 = vpop.eup %611 }
 0x57b   :  { %v484_v29 = vmul.f32 %v612_v28, %v612_v28 }
 0x57d   :  { %v485_v30 = vsub.f32 1.0, %v484_v29 }
 0x57f   :  { %v486_v31 = vmax.f32 %v485_v30, 0.0 }
 0x581   :  { %v487_v32 = vadd.f32 1e-06, %v486_v31 }
 0x583   :  { %613 = vlog2.f32 %v487_v32 }
 0x589   :  { %495 = vrot.lane.b32.xlu0 %v612_v28, %s620_s11 }
 0x58d   :  { %v614_v33 = vpop.eup %613  ;;  %498 = vrot.lane.b32.xlu0 %v461_v16, %s620_s11 }
 0x58e   :  { %v489_v34 = vmul.f32 0.6931472, %v614_v33 }
 0x590   :  { %v490_v35 = vsel %vm478_vm5, %v489_v34, 0.0 }
 0x591   :  { %491 = vadd.xlane.f32.xlu1 %v490_v35 }
 0x600   :  { %v481_v36 = vpop.xlane.xlu0 %480 }
 0x601   :  { %v544_v38 = vadd.f32 -3.675754, %v481_v36 }
 0x604   :  { %v496_v37 = vpop.permute.xlu0 %495 }
 0x605   :  { %v502_v41 = vsel %vm501_vm6, %v608_v13, %v496_v37 }
 0x608   :  { %v499_v39 = vpop.permute.xlu0 %498 }
 0x609   :  { %v504_v43 = vsel %vm503_vm7, %v502_v41, %v499_v39 }
 0x61e   :  { %v492_v40 = vpop.xlane.xlu1 %491 }
 0x61f   :  { %v493_v42 = vsub.f32 %v544_v38, %v492_v40 }
 0x621   :  { %v506_v44 = vsel %vm505_vm8, %v504_v43, %v493_v42 }
 0x622   :  { %v508_v45 = vsel %vm507_vm9, %v506_v44, 0.0 }
 0x623   :  { %509 = vst [vmem:[%s790_s12] sm:$0x3] %v508_v45 }

// kernel: actor_forward.2
= control target key start
LH: loop header
LB: loop body
LE: loop exit
PB: predicated region body
PF: predicated region fallthrough
CT: control target
= control target key end

     0   :  { %s3057_s18 = smov 0   ;;  %s3582_s0 = inlined_call_operand.vmem [shape: f32[2,64,16], index: 0, kind: input, shape index: {}]   ;;  %s3583_s1 = inlined_call_operand.vmem [shape: bf16[4,16,128], index: 1, kind: input, shape index: {}]   ;;  %s3584_s2 = inlined_call_operand.vmem [shape: bf16[9,128,128], index: 2, kind: input, shape index: {}]   ;;  %s3585_s3 = inlined_call_operand.vmem [shape: f32[1,128], index: 3, kind: input, shape index: {}]   ;;  %s3586_s4 = inlined_call_operand.vmem [shape: f32[1,128], index: 4, kind: input, shape index: {}]   ;;  %s3587_s5 = inlined_call_operand.vmem [shape: bf16[2,5,5,8], index: 5, kind: output, shape index: {}]  }
   0x1 LB: > { %s2148_s19 = sadd.s32 4294967295, %s3023_s18   ;;  %p2152_p0 = scmp.ge.s32.totalorder %s3023_s18, 1  ;;  %s3023_s18 = sphi %s3057_s18, %s15_s18  }
   0x2   : > { %p187_p1 = scmp.lt.s32.totalorder %s3023_s18, 3 }
   0x4   : > { %p188_p2 = pnand %p2152_p0, %p187_p1 }
   0x5   : > { %v2941_v0 = vld [vmem:[%s3583_s1] sm:$0xff] (!%p188_p2)   ;;  %p215_p3 = scmp.lt.s32.totalorder (!%p188_p2), %s2148_s19, 1  ;;  %v2942_v1 = vld [vmem:[%s3583_s1 + $0x8] sm:$0xff] (!%p188_p2)   ;;  %vm252_vm0 = vcmask (!%p188_p2), 130048   ;;  %v2943_v11 = vld [vmem:[%s3583_s1 + $0x10] sm:$0xff] (!%p188_p2)   ;;  %v3025_v40 = vmov (!%p188_p2), 0.0  }
   0x6   : > { %191 = sbr.rel (%p188_p2) target bundleno = 678 (0x2a6), region = 40  ;;  %2514 = vmatprep.subr.bf16.mxu0 (!%p188_p2), %v2941_v0  ;;  %v2944_v22 = vld [vmem:[%s3583_s1 + $0x18] sm:$0xff] (!%p188_p2)   ;;  %v2945_v38 = vld [vmem:[%s3584_s2] sm:$0xff] (!%p188_p2)   ;;  %2638 = vmatprep.subr.bf16.mxu1 (!%p188_p2), %v3025_v40  ;;  %v2947_v41 = vld [vmem:[%s3584_s2 + $0x8] sm:$0xff] (!%p188_p2)   ;;  %vm3026_vm1 = vmmov (!%p188_p2), 0   ;;  %vm2063_vm2 = vcmask (!%p188_p2), 59392  }
   0x7   : > { %2515 = vmatpush3.bf16.msra.mxu0 (!%p188_p2), %v2941_v0  ;;  %v2946_v39 = vld [vmem:[%s3584_s2 + $0xc0] sm:$0xff] (!%p188_p2)   ;;  %v2948_v42 = vld [vmem:[%s3584_s2 + $0xc8] sm:$0xff] (!%p188_p2)   ;;  %v2949_v43 = vld [vmem:[%s3584_s2 + $0x10] sm:$0xff] (!%p188_p2)   ;;  %2654 = vmatprep.mubr.msk.bf16.mxu1 (!%p188_p2), %vm3026_vm1, %v3025_v40  ;;  %vm2064_vm3 = vsmask.f32 (!%p188_p2), 2304 }
   0x8   : > { %2524 = vmatprep.subr.bf16.mxu0 (!%p188_p2), %v2942_v1  ;;  %2639 = vmatpush3.bf16.msra.mxu1 (!%p188_p2), %v2946_v39  ;;  %v2950_v44 = vld [vmem:[%s3584_s2 + $0xd0] sm:$0xff] (!%p188_p2)   ;;  %v2951_v45 = vld [vmem:[%s3584_s2 + $0x18] sm:$0xff] (!%p188_p2)   ;;  %v2953_v47 = vld [vmem:[%s3584_s2 + $0x20] sm:$0xff] (!%p188_p2)  }
   0x9   : > { %2640 = vmatprep.subr.bf16.mxu1 (!%p188_p2), %v3025_v40  ;;  %v2952_v46 = vld [vmem:[%s3584_s2 + $0xd8] sm:$0xff] (!%p188_p2)   ;;  %v2954_v48 = vld [vmem:[%s3584_s2 + $0xe0] sm:$0xff] (!%p188_p2)   ;;  %v2955_v49 = vld [vmem:[%s3584_s2 + $0x28] sm:$0xff] (!%p188_p2)  }
   0xa   : > { %v2956_v50 = vld [vmem:[%s3584_s2 + $0xe8] sm:$0xff] (!%p188_p2)   ;;  %v2957_v51 = vld [vmem:[%s3584_s2 + $0x30] sm:$0xff] (!%p188_p2)   ;;  %v2959_v53 = vld [vmem:[%s3584_s2 + $0x38] sm:$0xff] (!%p188_p2)  }
   0xb   : > { %v2958_v52 = vld [vmem:[%s3584_s2 + $0xf0] sm:$0xff] (!%p188_p2)   ;;  %v2960_v54 = vld [vmem:[%s3584_s2 + $0xf8] sm:$0xff] (!%p188_p2)   ;;  %v2156_v55 = vld [vmem:[%s3585_s3] ss:$0 sm:$0xff] (!%p188_p2) }
   0xc   : > { %2641 = vmatpush3.bf16.msra.mxu1 (!%p188_p2), %v2948_v42  ;;  %v2963_v39 = vld [vmem:[%s3584_s2 + $0x48] sm:$0xff] (!%p188_p2)   ;;  %vm3555_vm4 = vmand (!%p188_p2), %vm2063_vm2, %vm2064_vm3 }
   0xd   : > { %s3591_s19 = smov (!%p215_p3, %s2148_s19), 1  ;;  %2642 = vmatprep.subr.bf16.mxu1 %v3025_v40 }
   0xe   : > { %s2394_s24 = sshll.u32 %s3591_s19, 6  ;;  %s2930_s17 = smul.u32 20, %s3591_s19 }
   0xf   : > { %s3077_s27 = scalar_lea.vmem %s3582_s0, %s2394_s24 }
  0x10   : > { %v226_v2 = vld [vmem:[%s3077_s27] sm:$0xff]  ;;  %v227_v3 = vld [vmem:[%s3077_s27 + $0x8] sm:$0xff]  ;;  %v228_v4 = vld [vmem:[%s3077_s27 + $0x10] sm:$0xff]  ;;  %2643 = vmatpush3.bf16.msra.mxu1 %v2950_v44  ;;  %s3552_s22 = scalar_lea.vmem %s3587_s5, %s2930_s17 }
  0x11   : > { %v233_v5 = vpack.c.bf16 %v227_v3, %v226_v2  ;;  %v229_v6 = vld [vmem:[%s3077_s27 + $0x18] sm:$0xff]  ;;  %v230_v7 = vld [vmem:[%s3077_s27 + $0x20] sm:$0xff]  ;;  %v231_v8 = vld [vmem:[%s3077_s27 + $0x28] sm:$0xff]  ;;  %v460_v26 = vpack.c.bf16 %v228_v4, %v227_v3  ;;  %2644 = vmatprep.subr.bf16.mxu1 %v3025_v40 }
  0x12   : > { %v234_v9 = vpack.c.bf16 %v229_v6, %v228_v4  ;;  %v235_v10 = vpack.c.bf16 %v231_v8, %v230_v7  ;;  %v232_v12 = vld [vmem:[%s3077_s27 + $0x30] sm:$0x7f]  ;;  %v336_v13 = vld [vmem:[%s3077_s27 + $0x1] sm:$0xff]  ;;  %v339_v18 = vld [vmem:[%s3077_s27 + $0x19] sm:$0xff]  ;;  %v461_v28 = vpack.c.bf16 %v230_v7, %v229_v6 }
  0x13   : > { %2516 = vmatprep.mubr.msk.bf16.mxu0 %vm252_vm0, %v233_v5  ;;  %v337_v14 = vld [vmem:[%s3077_s27 + $0x9] sm:$0xff]  ;;  %v236_v15 = vpack.c.bf16 %v232_v12, %v232_v12  ;;  %v338_v17 = vld [vmem:[%s3077_s27 + $0x11] sm:$0xff]  ;;  %v340_v19 = vld [vmem:[%s3077_s27 + $0x21] sm:$0xff] }
  0x14   : > { %2517 = vmatmul.mubr.msk.bf16.vlgmr.msra.gmra.mrb[0].mxu0 %vm252_vm0, %v234_v9  ;;  %v343_v16 = vpack.c.bf16 %v337_v14, %v336_v13  ;;  %v341_v20 = vld [vmem:[%s3077_s27 + $0x29] sm:$0xff]  ;;  %v344_v21 = vpack.c.bf16 %v339_v18, %v338_v17  ;;  %v342_v24 = vld [vmem:[%s3077_s27 + $0x31] sm:$0x7f]  ;;  %v459_v30 = vld [vmem:[%s3077_s27 + $0x38] sm:$0x7f]  ;;  %v577_v32 = vpack.c.bf16 %v338_v17, %v337_v14  ;;  %v578_v34 = vpack.c.bf16 %v340_v19, %v339_v18 }
  0x15   : > { %2525 = vmatpush3.bf16.msra.mxu0 %v2942_v1  ;;  %2520 = vmatprep.mubr.msk.bf16.mxu0 %vm252_vm0, %v235_v10  ;;  %v345_v23 = vpack.c.bf16 %v341_v20, %v340_v19  ;;  %v346_v25 = vpack.c.bf16 %v342_v24, %v342_v24  ;;  %v458_v27 = vld [vmem:[%s3077_s27 + $0x30] sm:$0xff]  ;;  %v463_v31 = vpack.c.bf16 %v459_v30, %v459_v30  ;;  %v576_v36 = vld [vmem:[%s3077_s27 + $0x39] sm:$0x7f] }
  0x16   : > { %2534 = vmatprep.subr.bf16.mxu0 %v2943_v11  ;;  %v462_v29 = vpack.c.bf16 %v458_v27, %v231_v8  ;;  %v575_v33 = vld [vmem:[%s3077_s27 + $0x31] sm:$0xff]  ;;  %v580_v37 = vpack.c.bf16 %v576_v36, %v576_v36  ;;  %2645 = vmatpush3.bf16.msra.mxu1 %v2952_v46  ;;  %v2961_v27 = vld [vmem:[%s3584_s2 + $0x40] sm:$0xff]  }
  0x17   : > { %v579_v35 = vpack.c.bf16 %v575_v33, %v341_v20  ;;  %2646 = vmatprep.subr.bf16.mxu1 %v3025_v40  ;;  %v2965_v46 = vld [vmem:[%s3584_s2 + $0x50] sm:$0xff]  }
  0x1a   : > { %2647 = vmatpush3.bf16.msra.mxu1 %v2954_v48 }
  0x1b   : > { %2648 = vmatprep.subr.bf16.mxu1 %v3025_v40 }
  0x1c   : > { %2521 = vmatmul.mubr.msk.bf16.gmra.mrb[4].mxu0 %vm252_vm0, %v236_v15 }
  0x1d   : > { %2526 = vmatprep.mubr.msk.bf16.mxu0 %vm252_vm0, %v343_v16 }
  0x1e   : > { %2649 = vmatpush3.bf16.msra.mxu1 %v2956_v50 }
  0x1f   : > { %2650 = vmatprep.subr.bf16.mxu1 %v3025_v40 }
  0x22   : > { %2651 = vmatpush3.bf16.msra.mxu1 %v2958_v52  ;;  %v2968_v52 = vld [vmem:[%s3584_s2 + $0x118] sm:$0xff]  }
  0x23   : > { %2652 = vmatprep.subr.bf16.mxu1 %v3025_v40 }
  0x24   : > { %2527 = vmatmul.mubr.msk.bf16.vlgmr.msra.gmra.mrb[0].mxu0 %vm252_vm0, %v344_v21 }
  0x25   : > { %2535 = vmatpush3.bf16.msra.mxu0 %v2943_v11  ;;  %2530 = vmatprep.mubr.msk.bf16.mxu0 %vm252_vm0, %v345_v23 }
  0x26   : > { %2544 = vmatprep.subr.bf16.mxu0 %v2944_v22  ;;  %2653 = vmatpush3.bf16.msra.mxu1 %v2960_v54  ;;  %v2969_v54 = vld [vmem:[%s3584_s2 + $0x60] sm:$0xff]  }
  0x27   : > { %2666 = vmatprep.subr.bf16.mxu1 %v3025_v40 }
  0x2c   : > { %2531 = vmatmul.mubr.msk.bf16.gmra.mrb[8].mxu0 %vm252_vm0, %v346_v25 }
  0x2d   : > { %2536 = vmatprep.mubr.msk.bf16.mxu0 %vm252_vm0, %v460_v26 }
  0x34   : > { %2537 = vmatmul.mubr.msk.bf16.vlgmr.msra.gmra.mrb[0].mxu0 %vm252_vm0, %v461_v28  ;;  %v2962_v28 = vld [vmem:[%s3584_s2 + $0x100] sm:$0xff]  }
  0x35   : > { %2545 = vmatpush3.bf16.msra.mxu0 %v2944_v22  ;;  %2540 = vmatprep.mubr.msk.bf16.mxu0 %vm252_vm0, %v462_v29 }
  0x36   : > { %2554 = vmatprep.subr.bf16.mxu0 %v3025_v40 }
  0x3c   : > { %2541 = vmatmul.mubr.msk.bf16.gmra.mrb[12].mxu0 %vm252_vm0, %v463_v31 }
  0x3d   : > { %2546 = vmatprep.mubr.msk.bf16.mxu0 %vm252_vm0, %v577_v32 }
  0x44   : > { %2547 = vmatmul.mubr.msk.bf16.vlgmr.msra.gmra.mrb[0].mxu0 %vm252_vm0, %v578_v34 }
  0x45   : > { %2550 = vmatprep.mubr.msk.bf16.mxu0 %vm252_vm0, %v579_v35  ;;  %2555 = vmatpush3.bf16.msra.mxu0 %v2945_v38 }
  0x46   : > { %2556 = vmatprep.subr.bf16.mxu0 %v3025_v40 }
  0x49   : > { %2557 = vmatpush3.bf16.msra.mxu0 %v2947_v41  ;;  %v2964_v41 = vld [vmem:[%s3584_s2 + $0x108] sm:$0xff]  }
  0x4a   : > { %2558 = vmatprep.subr.bf16.mxu0 %v3025_v40 }
  0x4c   : > { %2551 = vmatmul.mubr.msk.bf16.gmra.mrb[16].mxu0 %vm252_vm0, %v580_v37 }
  0x4d   : > { %2559 = vmatpush3.bf16.msra.mxu0 %v2949_v43  ;;  %2570 = vmatprep.mubr.msk.bf16.mxu0 %vm3026_vm1, %v3025_v40 }
  0x4e   : > { %2560 = vmatprep.subr.bf16.mxu0 %v3025_v40 }
  0x51   : > { %2561 = vmatpush3.bf16.msra.mxu0 %v2951_v45 }
  0x52   : > { %2562 = vmatprep.subr.bf16.mxu0 %v3025_v40 }
  0x55   : > { %2563 = vmatpush3.bf16.msra.mxu0 %v2953_v47  ;;  %v2966_v47 = vld [vmem:[%s3584_s2 + $0x110] sm:$0xff]  }
  0x56   : > { %2564 = vmatprep.subr.bf16.mxu0 %v3025_v40 }
  0x59   : > { %2565 = vmatpush3.bf16.msra.mxu0 %v2955_v49 }
  0x5a   : > { %2566 = vmatprep.subr.bf16.mxu0 %v3025_v40 }
  0x5d   : > { %2567 = vmatpush3.bf16.msra.mxu0 %v2957_v51  ;;  %v2967_v51 = vld [vmem:[%s3584_s2 + $0x58] sm:$0xff]  }
  0x5e   : > { %2568 = vmatprep.subr.bf16.mxu0 %v3025_v40 }
  0x61   : > { %2569 = vmatpush3.bf16.msra.mxu0 %v2959_v53 }
  0x62   : > { %2582 = vmatprep.subr.bf16.mxu0 %v3025_v40 }
  0xef   : > { %v2522_v56 = vpop.f32.mrb[4].mxu0 }
  0xf0   : > { %v324_v57 = vadd.f32 %v2522_v56, %v2156_v55  ;;  %v315_v58 = vpop.f32.mrb[5].mxu0 }
  0xf1   : > { %v2523_v59 = vpop.f32.mrb[6].mxu0  ;;  %v316_v61 = vadd.f32 %v2156_v55, %v315_v58  ;;  %v2972_v58 = vld [vmem:[%s3584_s2 + $0x128] sm:$0xff]  }
  0xf2   : > { %335 = vst [vmem:[#allocation2 + $0x30] sm:$0x7f] %v324_v57  ;;  %v318_v60 = vpop.f32.mrb[7].mxu0  ;;  %v2971_v57 = vld [vmem:[%s3584_s2 + $0x68] sm:$0xff]  }
  0xf3   : > { %v319_v2 = vadd.f32 %v2156_v55, %v318_v60 }
  0xf9   : > { %v438_v63 = vld [vmem:[#allocation2 + $0x30] sm:$0x7f] }
  0xff   : > { %v2532_v62 = vpop.f32.mrb[8].mxu0 }
 0x100   : > { %v445_v0 = vadd.f32 %v2532_v62, %v438_v63  ;;  %v418_v1 = vpop.f32.mrb[9].mxu0 }
 0x101   : > { %v443_v3 = vadd.f32 %v418_v1, %v316_v61  ;;  %v2533_v4 = vpop.f32.mrb[10].mxu0  ;;  %v2974_v1 = vld [vmem:[%s3584_s2 + $0x130] sm:$0xff]  }
 0x102   : > { %452 = vst [vmem:[#allocation2 + $0x30] sm:$0x7f] %v445_v0  ;;  %v421_v5 = vpop.f32.mrb[11].mxu0  ;;  %v2973_v0 = vld [vmem:[%s3584_s2 + $0x70] sm:$0xff]  }
 0x103   : > { %v444_v6 = vadd.f32 %v421_v5, %v319_v2  ;;  %v2975_v2 = vld [vmem:[%s3584_s2 + $0x78] sm:$0xff]  }
 0x109   : > { %v555_v8 = vld [vmem:[#allocation2 + $0x30] sm:$0x7f] }
 0x10f   : > { %v2542_v7 = vpop.f32.mrb[12].mxu0 }
 0x110   : > { %v562_v9 = vadd.f32 %v2542_v7, %v555_v8  ;;  %v535_v10 = vpop.f32.mrb[13].mxu0  ;;  %v2977_v7 = vld [vmem:[%s3584_s2 + $0x80] sm:$0xff]  }
 0x111   : > { %v560_v11 = vadd.f32 %v535_v10, %v443_v3  ;;  %v2543_v12 = vpop.f32.mrb[14].mxu0  ;;  %v2976_v3 = vld [vmem:[%s3584_s2 + $0x138] sm:$0xff]  }
 0x112   : > { %569 = vst [vmem:[#allocation2 + $0x30] sm:$0x7f] %v562_v9  ;;  %v538_v13 = vpop.f32.mrb[15].mxu0  ;;  %v2978_v9 = vld [vmem:[%s3584_s2 + $0x140] sm:$0xff]   ;;  %v2980_v12 = vld [vmem:[%s3584_s2 + $0x148] sm:$0xff]  }
 0x113   : > { %v561_v14 = vadd.f32 %v538_v13, %v444_v6 }
 0x117   : > { %v2548_v15 = vpop.f32.mrb[0].mxu0 }
 0x118   : > { %v2824_v16 = vadd.f32 %v2548_v15, %v2156_v55  ;;  %v636_v17 = vpop.f32.mrb[1].mxu0 }
 0x119   : > { %v2827_v18 = vadd.f32 %v2156_v55, %v636_v17  ;;  %v2549_v19 = vpop.f32.mrb[2].mxu0  ;;  %v672_v31 = vld [vmem:[#allocation2 + $0x30] sm:$0x7f] }
 0x11a   : > { %v696_v20 = vmax.f32 %v2824_v16, 0.0  ;;  %v2830_v21 = vadd.f32 %v2549_v19, %v2156_v55  ;;  %v639_v22 = vpop.f32.mrb[3].mxu0  ;;  %v2982_v16 = vld [vmem:[%s3584_s2 + $0x150] sm:$0xff]   ;;  %v2984_v19 = vld [vmem:[%s3584_s2 + $0x158] sm:$0xff]  }
 0x11b   : > { %v694_v23 = vmax.f32 %v2827_v18, 0.0  ;;  %v2833_v24 = vadd.f32 %v2156_v55, %v639_v22  ;;  %v2970_v55 = vld [vmem:[%s3584_s2 + $0x120] sm:$0xff]   ;;  %v2983_v18 = vld [vmem:[%s3584_s2 + $0x98] sm:$0xff]  }
 0x11c   : > { %703 = vst [vmem:[#allocation2 + $0x10] sm:$0xff] %v696_v20  ;;  %v697_v25 = vmax.f32 %v2830_v21, 0.0  ;;  %v2985_v22 = vld [vmem:[%s3584_s2 + $0xa0] sm:$0xff]  }
 0x11d   : > { %701 = vst [vmem:[#allocation2] sm:$0xff] %v694_v23  ;;  %v695_v26 = vmax.f32 %v2833_v24, 0.0  ;;  %v2986_v24 = vld [vmem:[%s3584_s2 + $0x160] sm:$0xff]  }
 0x11e   : > { %704 = vst [vmem:[#allocation2 + $0x18] sm:$0xff] %v697_v25  ;;  %v3198_v29 = vpack.c.bf16 %v697_v25, %v696_v20 }
 0x11f   : > { %702 = vst [vmem:[#allocation2 + $0x8] sm:$0xff] %v695_v26  ;;  %v2552_v30 = vpop.f32.mrb[16].mxu0  ;;  %v714_v32 = vpack.c.bf16 %v695_v26, %v694_v23  ;;  %v1155_v33 = vpack.c.bf16 %v696_v20, %v695_v26  ;;  %v2987_v26 = vld [vmem:[%s3584_s2 + $0xa8] sm:$0xff]  }
 0x120   : > { %v679_v34 = vadd.f32 %v2552_v30, %v672_v31  ;;  %v652_v35 = vpop.f32.mrb[17].mxu0  ;;  %v2990_v30 = vld [vmem:[%s3584_s2 + $0x170] sm:$0xff]   ;;  %v2991_v31 = vld [vmem:[%s3584_s2 + $0xb8] sm:$0xff]  }
 0x121   : > { %v677_v36 = vadd.f32 %v652_v35, %v560_v11  ;;  %v2553_v37 = vpop.f32.mrb[18].mxu0  ;;  %2571 = vmatmul.mubr.bf16.vlgmr.msra.gmra.mrb[20].mxu0 %v714_v32  ;;  %2655 = vmatmul.mubr.bf16.vlgmr.msra.gmra.mrb[0].mxu1 %v1155_v33  ;;  %v2979_v11 = vld [vmem:[%s3584_s2 + $0x88] sm:$0xff]   ;;  %v2992_v32 = vld [vmem:[%s3584_s2 + $0x178] sm:$0xff]  }
 0x122   : > { %686 = vst [vmem:[#allocation2 + $0x30] sm:$0x7f] %v679_v34  ;;  %v655_v38 = vpop.f32.mrb[19].mxu0  ;;  %2583 = vmatpush3.bf16.msra.mxu0 %v2961_v27  ;;  %2667 = vmatpush3.bf16.msra.mxu1 %v2962_v28  ;;  %v2988_v27 = vld [vmem:[%s3584_s2 + $0x168] sm:$0xff]   ;;  %v2989_v28 = vld [vmem:[%s3584_s2 + $0xb0] sm:$0xff]  }
 0x123   : > { %v3206_v42 = vmax.f32 %v677_v36, 0.0  ;;  %v678_v43 = vadd.f32 %v655_v38, %v561_v14  ;;  %2584 = vmatprep.subr.bf16.mxu0 %v3025_v40  ;;  %2668 = vmatprep.subr.bf16.mxu1 %v3025_v40  ;;  %v2981_v14 = vld [vmem:[%s3584_s2 + $0x90] sm:$0xff]   ;;  %v3371_v36 = vld [vmem:[%s3584_s2 + $0x200] sm:$0xff]  }
 0x124   : > { %2574 = vmatprep.mubr.msk.bf16.mxu0 %vm3026_vm1, %v3025_v40  ;;  %2658 = vmatprep.mubr.msk.bf16.mxu1 %vm3026_vm1, %v3025_v40  ;;  %v2993_v38 = vld [vmem:[%s3584_s2 + $0x180] sm:$0xff]  }
 0x125   : > { %705 = vst [vmem:[#allocation2 + $0x20] sm:$0xff] %v3206_v42  ;;  %v3215_v44 = vmax.f32 %v678_v43, 0.0  ;;  %v1156_v45 = vpack.c.bf16 %v3206_v42, %v697_v25  ;;  %v1299_v6 = vld [vmem:[#allocation2 + $0x11] sm:$0xff]  ;;  %v2995_v43 = vld [vmem:[%s3584_s2 + $0x188] sm:$0xff]  }
 0x126   : > { %2585 = vmatpush3.bf16.msra.mxu0 %v2963_v39  ;;  %2669 = vmatpush3.bf16.msra.mxu1 %v2964_v41  ;;  %v851_v4 = vld [vmem:[#allocation2 + $0x1] sm:$0xff]  ;;  %v852_v5 = vld [vmem:[#allocation2 + $0x9] sm:$0xff]  ;;  %v1448_v35 = vld [vmem:[#allocation2 + $0x12] sm:$0xff] }
 0x127   : > { %706 = vst [vmem:[#allocation2 + $0x28] sm:$0xff] %v3215_v44  ;;  %2586 = vmatprep.subr.bf16.mxu0 %v3025_v40  ;;  %2670 = vmatprep.subr.bf16.mxu1 %v3025_v40  ;;  %v1603_v48 = vpack.c.bf16 %v3215_v44, %v3206_v42  ;;  %v857_v8 = vpack.c.bf16 %v852_v5, %v851_v4  ;;  %v1000_v33 = vld [vmem:[#allocation2 + $0x2] sm:$0xff]  ;;  %v1001_v34 = vld [vmem:[#allocation2 + $0xa] sm:$0xff]  ;;  %v3464_v4 = vld [vmem:[%s3584_s2 + $0x238] sm:$0xff]  }
 0x128   : > { %v1304_v10 = vpack.c.bf16 %v1299_v6, %v852_v5  ;;  %v1006_v37 = vpack.c.bf16 %v1001_v34, %v1000_v33  ;;  %v1453_v39 = vpack.c.bf16 %v1448_v35, %v1001_v34  ;;  %v3382_v41 = vld [vmem:[%s3584_s2 + $0x208] sm:$0xff]   ;;  %v3007_v5 = vld [vmem:[%s3584_s2 + $0x1b8] sm:$0xff]  }
 0x129   : > { %v693_v49 = vld [vmem:[#allocation2 + $0x30] sm:$0x7f]  ;;  %2575 = vmatmul.mubr.bf16.gmra.mrb[24].mxu0 %v3198_v29  ;;  %2659 = vmatmul.mubr.bf16.gmra.mrb[4].mxu1 %v1156_v45 }
 0x12a   : > { %v700_v50 = vmax.f32 %v693_v49, 0.0  ;;  %2587 = vmatpush3.bf16.msra.mxu0 %v2965_v46  ;;  %2671 = vmatpush3.bf16.msra.mxu1 %v2966_v47  ;;  %v3399_v47 = vld [vmem:[%s3584_s2 + $0x210] sm:$0xff]  }
 0x12b   : > { %2588 = vmatprep.subr.bf16.mxu0 %v3025_v40  ;;  %2672 = vmatprep.subr.bf16.mxu1 %v3025_v40 }
 0x12c   : > { %707 = vst [vmem:[#allocation2 + $0x30] sm:$0x7f] %v700_v50  ;;  %2578 = vmatprep.mubr.msk.bf16.mxu0 %vm3026_vm1, %v3025_v40  ;;  %2662 = vmatprep.mubr.msk.bf16.mxu1 %vm3026_vm1, %v3025_v40  ;;  %v854_v13 = vld [vmem:[#allocation2 + $0x19] sm:$0xff]  ;;  %v2997_v50 = vld [vmem:[%s3584_s2 + $0x190] sm:$0xff]  }
 0x12d   : > { %v3309_v15 = vpack.c.bf16 %v854_v13, %v1299_v6  ;;  %v1003_v45 = vld [vmem:[#allocation2 + $0x1a] sm:$0xff] }
 0x12e   : > { %2589 = vmatpush3.bf16.msra.mxu0 %v2967_v51  ;;  %2673 = vmatpush3.bf16.msra.mxu1 %v2968_v52  ;;  %v713_v53 = vld [vmem:[#allocation2 + $0x28] sm:$0x3f]  ;;  %v1007_v49 = vpack.c.bf16 %v1003_v45, %v1448_v35  ;;  %v3411_v52 = vld [vmem:[%s3584_s2 + $0x218] sm:$0xff]   ;;  %v3009_v6 = vld [vmem:[%s3584_s2 + $0x1c0] sm:$0xff]  }
 0x12f   : > { %2590 = vmatprep.subr.bf16.mxu0 %v3025_v40  ;;  %2674 = vmatprep.subr.bf16.mxu1 %v3025_v40  ;;  %v716_v56 = vpack.c.bf16 %v713_v53, %v3206_v42  ;;  %v3259_v60 = vld [vmem:[#allocation2 + $0x21] sm:$0xff]  ;;  %v856_v20 = vld [vmem:[#allocation2 + $0x29] sm:$0x3f]  ;;  %v2999_v53 = vld [vmem:[%s3584_s2 + $0x198] sm:$0xff]  }
 0x130   : > { %v1305_v17 = vpack.c.bf16 %v3259_v60, %v854_v13  ;;  %v859_v23 = vpack.c.bf16 %v856_v20, %v3259_v60  ;;  %v3393_v46 = vld [vmem:[#allocation2 + $0x22] sm:$0xff] }
 0x131   : > { %2579 = vmatmul.mubr.bf16.gmra.mrb[28].mxu0 %v716_v56  ;;  %v1454_v51 = vpack.c.bf16 %v3393_v46, %v1003_v45  ;;  %v3014_v42 = vld [vmem:[%s3584_s2 + $0x1e8] sm:$0xff]  }
 0x132   : > { %2591 = vmatpush3.bf16.msra.mxu0 %v2969_v54  ;;  %2675 = vmatpush3.bf16.msra.mxu1 %v2970_v55  ;;  %v1005_v54 = vld [vmem:[#allocation2 + $0x2a] sm:$0x3f] }
 0x133   : > { %v1154_v59 = vld [vmem:[#allocation2 + $0x30] sm:$0x3f]  ;;  %2592 = vmatprep.subr.bf16.mxu0 %v3025_v40  ;;  %2676 = vmatprep.subr.bf16.mxu1 %v3025_v40 }
 0x134   : > { %v3261_v61 = vld [vmem:[#allocation2 + $0x29] sm:$0xff]  ;;  %v1157_v62 = vpack.c.bf16 %v1154_v59, %v3215_v44  ;;  %2598 = vmatprep.mubr.msk.bf16.mxu0 %vm3026_vm1, %v3025_v40  ;;  %v1303_v21 = vld [vmem:[#allocation2 + $0x31] sm:$0x3f]  ;;  %v3001_v59 = vld [vmem:[%s3584_s2 + $0x1a0] sm:$0xff]  }
 0x135   : > { %v1752_v63 = vpack.c.bf16 %v3261_v61, %v3259_v60  ;;  %v1306_v25 = vpack.c.bf16 %v1303_v21, %v3261_v61  ;;  %v1451_v55 = vld [vmem:[#allocation2 + $0x2a] sm:$0xff]  ;;  %v1452_v56 = vld [vmem:[#allocation2 + $0x32] sm:$0x3f]  ;;  %v1899_v61 = vld [vmem:[#allocation2 + $0x3a] sm:$0x3f] }
 0x136   : > { %2663 = vmatmul.mubr.bf16.gmra.mrb[8].mxu1 %v1157_v62  ;;  %2593 = vmatpush3.bf16.msra.mxu0 %v2971_v57  ;;  %v3426_v57 = vld [vmem:[%s3584_s2 + $0x220] sm:$0xff]   ;;  %v1455_v62 = vpack.c.bf16 %v1452_v56, %v1451_v55  ;;  %v3015_v44 = vld [vmem:[%s3584_s2 + $0x1f0] sm:$0xff]  }
 0x137   : > { %2677 = vmatpush3.bf16.msra.mxu1 %v2972_v58  ;;  %2594 = vmatprep.subr.bf16.mxu0 %v3025_v40  ;;  %v1008_v58 = vpack.c.bf16 %v1005_v54, %v3393_v46  ;;  %v1898_v60 = vld [vmem:[#allocation2 + $0x32] sm:$0xff] }
 0x138   : > { %2678 = vmatprep.subr.bf16.mxu1 %v3025_v40  ;;  %2682 = vmatprep.mubr.msk.bf16.mxu1 %vm3026_vm1, %v3025_v40 }
 0x13a   : > { %2595 = vmatpush3.bf16.msra.mxu0 %v2973_v0  ;;  %v3438_v0 = vld [vmem:[%s3584_s2 + $0x228] sm:$0xff]  }
 0x13b   : > { %2679 = vmatpush3.bf16.msra.mxu1 %v2974_v1  ;;  %2596 = vmatprep.subr.bf16.mxu0 %v3025_v40  ;;  %v3003_v1 = vld [vmem:[%s3584_s2 + $0x1a8] sm:$0xff]  }
 0x13c   : > { %2680 = vmatprep.subr.bf16.mxu1 %v3025_v40 }
 0x13e   : > { %2597 = vmatpush3.bf16.msra.mxu0 %v2975_v2  ;;  %v3453_v2 = vld [vmem:[%s3584_s2 + $0x230] sm:$0xff]  }
 0x13f   : > { %2681 = vmatpush3.bf16.msra.mxu1 %v2976_v3  ;;  %2610 = vmatprep.subr.bf16.mxu0 %v3025_v40  ;;  %v3005_v3 = vld [vmem:[%s3584_s2 + $0x1b0] sm:$0xff]  }
 0x140   : > { %2694 = vmatprep.subr.bf16.mxu1 %v3025_v40 }
 0x141   : > { %2599 = vmatmul.mubr.bf16.vlgmr.msra.gmra.mrb[20].mxu0 %v857_v8  ;;  %v1901_v8 = vpack.c.bf16 %v1451_v55, %v3393_v46 }
 0x142   : > { %2683 = vmatmul.mubr.bf16.vlgmr.msra.gmra.mrb[0].mxu1 %v1304_v10  ;;  %2611 = vmatpush3.bf16.msra.mxu0 %v2977_v7  ;;  %v3010_v7 = vld [vmem:[%s3584_s2 + $0x1c8] sm:$0xff]   ;;  %v1600_v10 = vld [vmem:[#allocation2 + $0x30] sm:$0xff] }
 0x143   : > { %2695 = vmatpush3.bf16.msra.mxu1 %v2978_v9  ;;  %2612 = vmatprep.subr.bf16.mxu0 %v3025_v40  ;;  %v3012_v9 = vld [vmem:[%s3584_s2 + $0x1d8] sm:$0xff]  }
 0x144   : > { %2696 = vmatprep.subr.bf16.mxu1 %v3025_v40  ;;  %2602 = vmatprep.mubr.msk.bf16.mxu0 %vm3026_vm1, %v3025_v40 }
 0x145   : > { %2686 = vmatprep.mubr.msk.bf16.mxu1 %vm3026_vm1, %v3025_v40 }
 0x146   : > { %2613 = vmatpush3.bf16.msra.mxu0 %v2979_v11  ;;  %v1601_v11 = vld [vmem:[#allocation2 + $0x38] sm:$0x3f] }
 0x147   : > { %2697 = vmatpush3.bf16.msra.mxu1 %v2980_v12  ;;  %2614 = vmatprep.subr.bf16.mxu0 %v3025_v40  ;;  %v3013_v12 = vld [vmem:[%s3584_s2 + $0x1e0] sm:$0xff]   ;;  %v1604_v13 = vpack.c.bf16 %v1601_v11, %v1600_v10 }
 0x148   : > { %2698 = vmatprep.subr.bf16.mxu1 %v3025_v40 }
 0x149   : > { %2603 = vmatmul.mubr.bf16.gmra.mrb[24].mxu0 %v3309_v15 }
 0x14a   : > { %2687 = vmatmul.mubr.bf16.gmra.mrb[4].mxu1 %v1305_v17  ;;  %2615 = vmatpush3.bf16.msra.mxu0 %v2981_v14  ;;  %v1749_v14 = vld [vmem:[#allocation2 + $0x31] sm:$0xff]  ;;  %v2183_v17 = vld [vmem:[%s3586_s4] ss:$0 sm:$0xff] }
 0x14b   : > { %2699 = vmatpush3.bf16.msra.mxu1 %v2982_v16  ;;  %2616 = vmatprep.subr.bf16.mxu0 %v3025_v40 }
 0x14c   : > { %2700 = vmatprep.subr.bf16.mxu1 %v3025_v40  ;;  %2606 = vmatprep.mubr.msk.bf16.mxu0 %vm3026_vm1, %v3025_v40 }
 0x14d   : > { %2690 = vmatprep.mubr.msk.bf16.mxu1 %vm3026_vm1, %v3025_v40 }
 0x14e   : > { %2617 = vmatpush3.bf16.msra.mxu0 %v2983_v18 }
 0x14f   : > { %2701 = vmatpush3.bf16.msra.mxu1 %v2984_v19  ;;  %2618 = vmatprep.subr.bf16.mxu0 %v3025_v40 }
 0x150   : > { %2702 = vmatprep.subr.bf16.mxu1 %v3025_v40 }
 0x151   : > { %2607 = vmatmul.mubr.bf16.gmra.mrb[32].mxu0 %v859_v23 }
 0x152   : > { %2691 = vmatmul.mubr.bf16.gmra.mrb[12].mxu1 %v1306_v25  ;;  %2619 = vmatpush3.bf16.msra.mxu0 %v2985_v22 }
 0x153   : > { %2703 = vmatpush3.bf16.msra.mxu1 %v2986_v24  ;;  %2620 = vmatprep.subr.bf16.mxu0 %v3025_v40 }
 0x154   : > { %2704 = vmatprep.subr.bf16.mxu1 %v3025_v40  ;;  %2626 = vmatprep.mubr.msk.bf16.mxu0 %vm3026_vm1, %v3025_v40 }
 0x155   : > { %2710 = vmatprep.mubr.msk.bf16.mxu1 %vm3026_vm1, %v3025_v40 }
 0x156   : > { %2621 = vmatpush3.bf16.msra.mxu0 %v2987_v26 }
 0x157   : > { %2705 = vmatpush3.bf16.msra.mxu1 %v2988_v27  ;;  %2622 = vmatprep.subr.bf16.mxu0 %v3025_v40 }
 0x158   : > { %2706 = vmatprep.subr.bf16.mxu1 %v3025_v40 }
 0x15a   : > { %2623 = vmatpush3.bf16.msra.mxu0 %v2989_v28 }
 0x15b   : > { %2707 = vmatpush3.bf16.msra.mxu1 %v2990_v30  ;;  %2624 = vmatprep.subr.bf16.mxu0 %v3025_v40 }
 0x15c   : > { %2708 = vmatprep.subr.bf16.mxu1 %v3025_v40 }
 0x15e   : > { %2625 = vmatpush3.bf16.msra.mxu0 %v2991_v31 }
 0x15f   : > { %2709 = vmatpush3.bf16.msra.mxu1 %v2992_v32  ;;  %2778 = vmatprep.subr.bf16.mxu0 %v3025_v40 }
 0x160   : > { %2722 = vmatprep.subr.bf16.mxu1 %v3025_v40 }
 0x161   : > { %2627 = vmatmul.mubr.bf16.vlgmr.msra.gmra.mrb[20].mxu0 %v1006_v37 }
 0x162   : > { %2711 = vmatmul.mubr.bf16.vlgmr.msra.gmra.mrb[0].mxu1 %v1453_v39  ;;  %2779 = vmatpush3.bf16.msra.mxu0 %v3371_v36 }
 0x163   : > { %2723 = vmatpush3.bf16.msra.mxu1 %v2993_v38  ;;  %2780 = vmatprep.subr.bf16.mxu0 %v3025_v40 }
 0x164   : > { %2724 = vmatprep.subr.bf16.mxu1 %v3025_v40  ;;  %2630 = vmatprep.mubr.msk.bf16.mxu0 %vm3026_vm1, %v3025_v40 }
 0x165   : > { %2714 = vmatprep.mubr.msk.bf16.mxu1 %vm3026_vm1, %v3025_v40 }
 0x166   : > { %2781 = vmatpush3.bf16.msra.mxu0 %v3382_v41 }
 0x167   : > { %2725 = vmatpush3.bf16.msra.mxu1 %v2995_v43  ;;  %2782 = vmatprep.subr.bf16.mxu0 %v3025_v40 }
 0x168   : > { %2726 = vmatprep.subr.bf16.mxu1 %v3025_v40 }
 0x169   : > { %2631 = vmatmul.mubr.bf16.gmra.mrb[24].mxu0 %v1007_v49 }
 0x16a   : > { %2715 = vmatmul.mubr.bf16.gmra.mrb[4].mxu1 %v1454_v51  ;;  %2783 = vmatpush3.bf16.msra.mxu0 %v3399_v47 }
 0x16b   : > { %2727 = vmatpush3.bf16.msra.mxu1 %v2997_v50  ;;  %2784 = vmatprep.subr.bf16.mxu0 %v3025_v40 }
 0x16c   : > { %2728 = vmatprep.subr.bf16.mxu1 %v3025_v40  ;;  %2634 = vmatprep.mubr.msk.bf16.mxu0 %vm3026_vm1, %v3025_v40 }
 0x16d   : > { %2718 = vmatprep.mubr.msk.bf16.mxu1 %vm3026_vm1, %v3025_v40 }
 0x16e   : > { %2785 = vmatpush3.bf16.msra.mxu0 %v3411_v52 }
 0x16f   : > { %2729 = vmatpush3.bf16.msra.mxu1 %v2999_v53  ;;  %2786 = vmatprep.subr.bf16.mxu0 %v3025_v40 }
 0x170   : > { %2730 = vmatprep.subr.bf16.mxu1 %v3025_v40 }
 0x171   : > { %2635 = vmatmul.mubr.bf16.gmra.mrb[36].mxu0 %v1008_v58 }
 0x172   : > { %2719 = vmatmul.mubr.bf16.gmra.mrb[16].mxu1 %v1455_v62  ;;  %2787 = vmatpush3.bf16.msra.mxu0 %v3426_v57 }
 0x173   : > { %2731 = vmatpush3.bf16.msra.mxu1 %v3001_v59  ;;  %2788 = vmatprep.subr.bf16.mxu0 %v3025_v40 }
 0x174   : > { %2732 = vmatprep.subr.bf16.mxu1 %v3025_v40  ;;  %2738 = vmatprep.mubr.msk.bf16.mxu1 %vm3026_vm1, %v3025_v40 }
 0x175   : > { %2794 = vmatprep.mubr.msk.bf16.mxu0 %vm3026_vm1, %v3025_v40 }
 0x176   : > { %2789 = vmatpush3.bf16.msra.mxu0 %v3438_v0 }
 0x177   : > { %2733 = vmatpush3.bf16.msra.mxu1 %v3003_v1  ;;  %2790 = vmatprep.subr.bf16.mxu0 %v3025_v40 }
 0x178   : > { %2734 = vmatprep.subr.bf16.mxu1 %v3025_v40 }
 0x17a   : > { %2791 = vmatpush3.bf16.msra.mxu0 %v3453_v2 }
 0x17b   : > { %2735 = vmatpush3.bf16.msra.mxu1 %v3005_v3  ;;  %2792 = vmatprep.subr.bf16.mxu0 %v3025_v40 }
 0x17c   : > { %2736 = vmatprep.subr.bf16.mxu1 %v3025_v40 }
 0x17e   : > { %2793 = vmatpush3.bf16.msra.mxu0 %v3464_v4 }
 0x17f   : > { %2737 = vmatpush3.bf16.msra.mxu1 %v3007_v5 }
 0x180   : > { %2750 = vmatprep.subr.bf16.mxu1 %v3025_v40 }
 0x181   : > { %2795 = vmatmul.mubr.bf16.vlgmr.msra.gmra.mrb[40].mxu0 %v1007_v49 }
 0x182   : > { %2739 = vmatmul.mubr.bf16.vlgmr.msra.gmra.mrb[0].mxu1 %v3198_v29  ;;  %2798 = vmatprep.mubr.msk.bf16.mxu0 %vm3026_vm1, %v3025_v40  ;;  %v3011_v29 = vld [vmem:[%s3584_s2 + $0x1d0] sm:$0xff]  }
 0x183   : > { %2751 = vmatpush3.bf16.msra.mxu1 %v3009_v6  ;;  %2742 = vmatprep.mubr.msk.bf16.mxu1 %vm3026_vm1, %v3025_v40 }
 0x184   : > { %2752 = vmatprep.subr.bf16.mxu1 %v3025_v40 }
 0x187   : > { %2753 = vmatpush3.bf16.msra.mxu1 %v3010_v7 }
 0x188   : > { %2754 = vmatprep.subr.bf16.mxu1 %v3025_v40 }
 0x189   : > { %2799 = vmatmul.mubr.bf16.gmra.mrb[44].mxu0 %v1901_v8 }
 0x18a   : > { %2743 = vmatmul.mubr.bf16.gmra.mrb[4].mxu1 %v1603_v48  ;;  %v3016_v48 = vld [vmem:[%s3584_s2 + $0x1f8] sm:$0xff]  }
 0x18b   : > { %2755 = vmatpush3.bf16.msra.mxu1 %v3011_v29  ;;  %2746 = vmatprep.mubr.msk.bf16.mxu1 %vm3026_vm1, %v3025_v40 }
 0x18c   : > { %2756 = vmatprep.subr.bf16.mxu1 %v3025_v40 }
 0x18f   : > { %2757 = vmatpush3.bf16.msra.mxu1 %v3012_v9 }
 0x190   : > { %2758 = vmatprep.subr.bf16.mxu1 %v3025_v40 }
 0x192   : > { %2747 = vmatmul.mubr.bf16.gmra.mrb[20].mxu1 %v1604_v13 }
 0x193   : > { %2759 = vmatpush3.bf16.msra.mxu1 %v3013_v12  ;;  %2766 = vmatprep.mubr.msk.bf16.mxu1 %vm3026_vm1, %v3025_v40 }
 0x194   : > { %2760 = vmatprep.subr.bf16.mxu1 %v3025_v40 }
 0x197   : > { %2761 = vmatpush3.bf16.msra.mxu1 %v3014_v42 }
 0x198   : > { %2762 = vmatprep.subr.bf16.mxu1 %v3025_v40 }
 0x19b   : > { %2763 = vmatpush3.bf16.msra.mxu1 %v3015_v44 }
 0x19c   : > { %2764 = vmatprep.subr.bf16.mxu1 %v3025_v40 }
 0x19f   : > { %2765 = vmatpush3.bf16.msra.mxu1 %v3016_v48 }
 0x1a0   : > { %2806 = vmatprep.subr.bf16.mxu1 %v3025_v40 }
 0x1a2   : > { %2767 = vmatmul.mubr.bf16.vlgmr.msra.gmra.mrb[0].mxu1 %v3309_v15  ;;  %v1750_v15 = vld [vmem:[#allocation2 + $0x39] sm:$0x3f] }
 0x1a3   : > { %2814 = vmatpush3.bf16.msra.mxu1 %v3371_v36  ;;  %2770 = vmatprep.mubr.msk.bf16.mxu1 %vm3026_vm1, %v3025_v40  ;;  %v1753_v16 = vpack.c.bf16 %v1750_v15, %v1749_v14 }
 0x1a4   : > { %2807 = vmatprep.subr.bf16.mxu1 %v3025_v40 }
 0x1a7   : > { %2815 = vmatpush3.bf16.msra.mxu1 %v3382_v41 }
 0x1a8   : > { %2808 = vmatprep.subr.bf16.mxu1 %v3025_v40 }
 0x1aa   : > { %2771 = vmatmul.mubr.bf16.gmra.mrb[4].mxu1 %v1752_v63  ;;  %v1902_v63 = vpack.c.bf16 %v1899_v61, %v1898_v60 }
 0x1ab   : > { %2816 = vmatpush3.bf16.msra.mxu1 %v3399_v47  ;;  %2774 = vmatprep.mubr.msk.bf16.mxu1 %vm3026_vm1, %v3025_v40 }
 0x1ac   : > { %2809 = vmatprep.subr.bf16.mxu1 %v3025_v40 }
 0x1af   : > { %2817 = vmatpush3.bf16.msra.mxu1 %v3411_v52 }
 0x1b0   : > { %2810 = vmatprep.subr.bf16.mxu1 %v3025_v40 }
 0x1b2   : > { %2775 = vmatmul.mubr.bf16.gmra.mrb[24].mxu1 %v1753_v16 }
 0x1b3   : > { %2818 = vmatpush3.bf16.msra.mxu1 %v3426_v57  ;;  %2802 = vmatprep.mubr.msk.bf16.mxu1 %vm3026_vm1, %v3025_v40 }
 0x1b4   : > { %2811 = vmatprep.subr.bf16.mxu1 %v3025_v40 }
 0x1b7   : > { %2819 = vmatpush3.bf16.msra.mxu1 %v3438_v0 }
 0x1b8   : > { %2812 = vmatprep.subr.bf16.mxu1 %v3025_v40 }
 0x1bb   : > { %2820 = vmatpush3.bf16.msra.mxu1 %v3453_v2 }
 0x1bc   : > { %2813 = vmatprep.subr.bf16.mxu1 %v3025_v40 }
 0x1bf   : > { %2821 = vmatpush3.bf16.msra.mxu1 %v3464_v4 }
 0x1c2   : > { %2803 = vmatmul.mubr.bf16.vlgmr.msra.gmra.mrb[28].mxu1 %v1902_v63 }
 0x204   : > { %v838_v18 = vpop.f32.mrb[28].mxu0 }
 0x205   : > { %v839_v19 = vadd.f32 %v2183_v17, %v838_v18  ;;  %v2580_v20 = vpop.f32.mrb[29].mxu0 }
 0x206   : > { %v841_v21 = vpop.f32.mrb[30].mxu0 }
 0x207   : > { %v842_v22 = vadd.f32 %v2183_v17, %v841_v21  ;;  %v2581_v23 = vpop.f32.mrb[31].mxu0 }
 0x209   : > { %v1273_v24 = vpop.f32.mrb[8].mxu1  ;;  %850 = vst [vmem:[#allocation3 + $0x28] sm:$0x3f] %v842_v22 }
 0x20a   : > { %v2664_v25 = vpop.f32.mrb[9].mxu1 }
 0x20b   : > { %v1276_v40 = vpop.f32.mrb[10].mxu1 }
 0x20c   : > { %v2665_v26 = vpop.f32.mrb[11].mxu1 }
 0x210   : > { %v987_v34 = vld [vmem:[#allocation3 + $0x28] sm:$0x3f] }
 0x224   : > { %v975_v27 = vpop.f32.mrb[32].mxu0 }
 0x225   : > { %v992_v28 = vadd.f32 %v975_v27, %v839_v19  ;;  %v1422_v30 = vpop.f32.mrb[12].mxu1  ;;  %v2608_v31 = vpop.f32.mrb[33].mxu0 }
 0x226   : > { %v2692_v32 = vpop.f32.mrb[13].mxu1  ;;  %v978_v33 = vpop.f32.mrb[34].mxu0 }
 0x227   : > { %v993_v35 = vadd.f32 %v987_v34, %v978_v33  ;;  %v1425_v36 = vpop.f32.mrb[14].mxu1  ;;  %v2609_v37 = vpop.f32.mrb[35].mxu0 }
 0x228   : > { %v2693_v38 = vpop.f32.mrb[15].mxu1 }
 0x229   : > { %999 = vst [vmem:[#allocation3 + $0x28] sm:$0x3f] %v993_v35 }
 0x230   : > { %v1136_v0 = vld [vmem:[#allocation3 + $0x28] sm:$0x3f] }
 0x234   : > { %v1108_v39 = vpop.f32.mrb[20].mxu0 }
 0x235   : > { %v2836_v41 = vadd.f32 %v2183_v17, %v1108_v39  ;;  %v2628_v43 = vpop.f32.mrb[21].mxu0 }
 0x236   : > { %v1111_v45 = vpop.f32.mrb[22].mxu0 }
 0x237   : > { %v2845_v46 = vadd.f32 %v2183_v17, %v1111_v45  ;;  %v2629_v47 = vpop.f32.mrb[23].mxu0 }
 0x23c   : > { %v1116_v49 = vpop.f32.mrb[24].mxu0 }
 0x23d   : > { %v2854_v50 = vadd.f32 %v2183_v17, %v1116_v49  ;;  %v2632_v51 = vpop.f32.mrb[25].mxu0 }
 0x23e   : > { %v1119_v52 = vpop.f32.mrb[26].mxu0  ;;  %v2384_v51 = vld [vmem:[%s3552_s22 + $0x4] sm:$0x7] }
 0x23f   : > { %v3546_v53 = vadd.f32 %v2183_v17, %v1119_v52  ;;  %v2633_v54 = vpop.f32.mrb[27].mxu0 }
 0x244   : > { %v1124_v55 = vpop.f32.mrb[36].mxu0 }
 0x245   : > { %v1141_v56 = vadd.f32 %v1124_v55, %v992_v28  ;;  %v1571_v57 = vpop.f32.mrb[16].mxu1  ;;  %v2636_v58 = vpop.f32.mrb[37].mxu0 }
 0x246   : > { %v2720_v59 = vpop.f32.mrb[17].mxu1  ;;  %v1127_v62 = vpop.f32.mrb[38].mxu0 }
 0x247   : > { %v1290_v1 = vadd.f32 %v1273_v24, %v1141_v56  ;;  %v1142_v2 = vadd.f32 %v1136_v0, %v1127_v62  ;;  %v1574_v3 = vpop.f32.mrb[18].mxu1  ;;  %v2637_v4 = vpop.f32.mrb[39].mxu0 }
 0x248   : > { %v2721_v5 = vpop.f32.mrb[19].mxu1 }
 0x249   : > { %v1439_v6 = vadd.f32 %v1422_v30, %v1290_v1  ;;  %1148 = vst [vmem:[#allocation3 + $0x28] sm:$0x3f] %v1142_v2  ;;  %v2386_v2 = vld [vmem:[%s3552_s22 + $0x8] sm:$0x7]  ;;  %v2388_v5 = vld [vmem:[%s3552_s22 + $0xc] sm:$0x7] }
 0x24b   : > { %v1588_v7 = vadd.f32 %v1571_v57, %v1439_v6 }
 0x250   : > { %v1285_v8 = vld [vmem:[#allocation3 + $0x28] sm:$0x3f] }
 0x251   : > { %v1291_v29 = vadd.f32 %v1285_v8, %v1276_v40 }
 0x253   : > { %1297 = vst [vmem:[#allocation3 + $0x28] sm:$0x3f] %v1291_v29 }
 0x254   : > { %v2002_v9 = vpop.f32.mrb[40].mxu0 }
 0x255   : > { %v2796_v10 = vpop.f32.mrb[41].mxu0 }
 0x256   : > { %v2005_v11 = vpop.f32.mrb[42].mxu0 }
 0x257   : > { %v2797_v12 = vpop.f32.mrb[43].mxu0 }
 0x25a   : > { %v1434_v13 = vld [vmem:[#allocation3 + $0x28] sm:$0x3f] }
 0x25b   : > { %v1440_v42 = vadd.f32 %v1434_v13, %v1425_v36 }
 0x25c   : > { %v2010_v44 = vpop.f32.mrb[44].mxu0 }
 0x25d   : > { %1446 = vst [vmem:[#allocation3 + $0x28] sm:$0x3f] %v1440_v42  ;;  %v2800_v48 = vpop.f32.mrb[45].mxu0 }
 0x25e   : > { %v2013_v14 = vpop.f32.mrb[46].mxu0 }
 0x25f   : > { %v2801_v15 = vpop.f32.mrb[47].mxu0 }
 0x264   : > { %v1583_v16 = vld [vmem:[#allocation3 + $0x28] sm:$0x3f] }
 0x265   : > { %v1589_v60 = vadd.f32 %v1583_v16, %v1574_v3  ;;  %v1720_v61 = vpop.f32.mrb[20].mxu1 }
 0x266   : > { %v1737_v63 = vadd.f32 %v1720_v61, %v1588_v7  ;;  %v2748_v17 = vpop.f32.mrb[21].mxu1 }
 0x267   : > { %1595 = vst [vmem:[#allocation3 + $0x28] sm:$0x3f] %v1589_v60  ;;  %v1723_v18 = vpop.f32.mrb[22].mxu1 }
 0x268   : > { %v2749_v19 = vpop.f32.mrb[23].mxu1 }
 0x26e   : > { %v1732_v20 = vld [vmem:[#allocation3 + $0x28] sm:$0x3f] }
 0x26f   : > { %v1738_v21 = vadd.f32 %v1732_v20, %v1723_v18 }
 0x271   : > { %1744 = vst [vmem:[#allocation3 + $0x28] sm:$0x3f] %v1738_v21 }
 0x275   : > { %v1853_v22 = vpop.f32.mrb[0].mxu1 }
 0x276   : > { %v2839_v23 = vadd.f32 %v2836_v41, %v1853_v22  ;;  %v2768_v24 = vpop.f32.mrb[1].mxu1 }
 0x277   : > { %v1856_v25 = vpop.f32.mrb[2].mxu1 }
 0x278   : > { %v2842_v40 = vadd.f32 %v2839_v23, %v2002_v9  ;;  %v2848_v26 = vadd.f32 %v2845_v46, %v1856_v25  ;;  %v2769_v27 = vpop.f32.mrb[3].mxu1  ;;  %v2066_v46 = vld [vmem:[%s3552_s22] sm:$0x7]  ;;  %v1881_v58 = vld [vmem:[#allocation3 + $0x28] sm:$0x3f] }
 0x27a   : > { %v2049_v28 = vmax.f32 %v2842_v40, 0.0  ;;  %v2851_v30 = vadd.f32 %v2848_v26, %v2005_v11 }
 0x27c   : > { %2055 = vst [vmem:[#allocation3] sm:$0xff] %v2049_v28  ;;  %v2050_v31 = vmax.f32 %v2851_v30, 0.0 }
 0x27d   : > { %v1861_v32 = vpop.f32.mrb[4].mxu1 }
 0x27e   : > { %2056 = vst [vmem:[#allocation3 + $0x8] sm:$0xff] %v2050_v31  ;;  %v2857_v33 = vadd.f32 %v2854_v50, %v1861_v32  ;;  %v2772_v34 = vpop.f32.mrb[5].mxu1 }
 0x27f   : > { %v1864_v35 = vpop.f32.mrb[6].mxu1 }
 0x280   : > { %v2860_v36 = vadd.f32 %v2857_v33, %v2010_v44  ;;  %v2866_v37 = vadd.f32 %v3546_v53, %v1864_v35  ;;  %v2773_v38 = vpop.f32.mrb[7].mxu1 }
 0x282   : > { %v2051_v39 = vmax.f32 %v2860_v36, 0.0  ;;  %v2869_v41 = vadd.f32 %v2866_v37, %v2013_v14  ;;  %v2390_v14 = vld [vmem:[%s3552_s22 + $0x10] sm:$0x7] }
 0x283   : > { %v2061_v43 = vld [vmem:[#allocation3] sm:$0x1f] }
 0x284   : > { %v2062_v47 = vpack.c.bf16 %v2061_v43, %v2061_v43  ;;  %2057 = vst [vmem:[#allocation3 + $0x10] sm:$0xff] %v2051_v39  ;;  %v2052_v49 = vmax.f32 %v2869_v41, 0.0 }
 0x285   : > { %v2069_v50 = vld [vmem:[#allocation3 + $0x8] sm:$0x1f]  ;;  %v1869_v52 = vpop.f32.mrb[24].mxu1 }
 0x286   : > { %v2067_v53 = vsel %vm3555_vm4, %v2062_v47, %v2066_v46  ;;  %v2070_v54 = vpack.c.bf16 %v2069_v50, %v2069_v50  ;;  %2058 = vst [vmem:[#allocation3 + $0x18] sm:$0xff] %v2052_v49  ;;  %v1886_v55 = vadd.f32 %v1869_v52, %v1737_v63  ;;  %v2776_v56 = vpop.f32.mrb[25].mxu1 }
 0x287   : > { %2068 = vst [vmem:[%s3552_s22] sm:$0x7] %v2067_v53  ;;  %v1872_v57 = vpop.f32.mrb[26].mxu1 }
 0x288   : > { %v2073_v59 = vsel %vm3555_vm4, %v2070_v54, %v2384_v51  ;;  %v1887_v62 = vadd.f32 %v1881_v58, %v1872_v57  ;;  %v2777_v0 = vpop.f32.mrb[27].mxu1 }
 0x289   : > { %2385 = vst [vmem:[%s3552_s22 + $0x4] sm:$0x7] %v2073_v59 }
 0x28a   : > { %1893 = vst [vmem:[#allocation3 + $0x28] sm:$0x3f] %v1887_v62 }
 0x28b   : > { %v2075_v1 = vld [vmem:[#allocation3 + $0x10] sm:$0x1f] }
 0x28c   : > { %v2076_v3 = vpack.c.bf16 %v2075_v1, %v2075_v1 }
 0x28d   : > { %v2081_v4 = vld [vmem:[#allocation3 + $0x18] sm:$0x1f] }
 0x28e   : > { %v2079_v6 = vsel %vm3555_vm4, %v2076_v3, %v2386_v2  ;;  %v2082_v7 = vpack.c.bf16 %v2081_v4, %v2081_v4 }
 0x28f   : > { %2387 = vst [vmem:[%s3552_s22 + $0x8] sm:$0x7] %v2079_v6 }
 0x290   : > { %v2085_v8 = vsel %vm3555_vm4, %v2082_v7, %v2388_v5 }
 0x291   : > { %2389 = vst [vmem:[%s3552_s22 + $0xc] sm:$0x7] %v2085_v8  ;;  %v2030_v12 = vld [vmem:[#allocation3 + $0x28] sm:$0x3f] }
 0x295   : > { %v2018_v29 = vpop.f32.mrb[28].mxu1 }
 0x296   : > { %v2035_v9 = vadd.f32 %v2018_v29, %v1886_v55  ;;  %v2804_v10 = vpop.f32.mrb[29].mxu1 }
 0x297   : > { %v2021_v11 = vpop.f32.mrb[30].mxu1 }
 0x298   : > { %v2053_v13 = vmax.f32 %v2035_v9, 0.0  ;;  %v2036_v42 = vadd.f32 %v2030_v12, %v2021_v11  ;;  %v2805_v44 = vpop.f32.mrb[31].mxu1 }
 0x29a   : > { %2059 = vst [vmem:[#allocation3 + $0x20] sm:$0xff] %v2053_v13  ;;  %2042 = vst [vmem:[#allocation3 + $0x28] sm:$0x3f] %v2036_v42 }
 0x2a1   : > { %v2087_v48 = vld [vmem:[#allocation3 + $0x20] sm:$0x1f]  ;;  %v2048_v15 = vld [vmem:[#allocation3 + $0x28] sm:$0x3f] }
 0x2a2   : > { %v2088_v16 = vpack.c.bf16 %v2087_v48, %v2087_v48  ;;  %v2054_v60 = vmax.f32 %v2048_v15, 0.0 }
 0x2a4   : > { %v2091_v61 = vsel %vm3555_vm4, %v2088_v16, %v2390_v14  ;;  %2060 = vst [vmem:[#allocation3 + $0x28] sm:$0x3f] %v2054_v60 }
 0x2a5   : > { %2391 = vst [vmem:[%s3552_s22 + $0x10] sm:$0x7] %v2091_v61 }
 0x2a6 PF: > { %s15_s18 = sadd.s32 1, %s3023_s18  }
 0x2a7   : > { %p12_p4 = scmp.ge.s32.totalorder %s15_s18, 4  }
 0x2a9   :  { %14 = sbr.rel (!%p12_p4) target bundleno = 1 (0x1), region = 85 }

</bundles_post_ra>
